<compile_context>
chip_gen: v7x
topology: tpu7x:2x2x1
jax: 0.10.0
libtpu: 0.0.40
codegen_flags: <defaults>
</compile_context>

<pallas_src>
import functools

import jax
import jax.numpy as jnp
from jax.experimental import pallas as pl
from jax.experimental.pallas import tpu as pltpu


def fused_mlp_kernel(x_ref, *refs, num_layers):
    """One row-tile of the full MLP: x -> [Linear -> ReLU]*(L-1) -> Linear.

    x_ref : (TN, C_in)  row tile of the input features
    refs  : w0, b0, w1, b1, ..., w_{L-1}, b_{L-1}, o_ref
            w_l : (C_in_l, C_out_l)  full weight, stored so the kernel does x @ W
            b_l : (1, C_out_l)       f32 bias row (single broadcast per layer)
            o_ref : (TN, C_out_last)
    """
    o_ref = refs[-1]
    wb_refs = refs[:-1]

    h = x_ref[...]
    for l in range(num_layers):
        w = wb_refs[2 * l][...]
        b = wb_refs[2 * l + 1][...]
        # f32 MXU accumulation regardless of compute dtype. Default MXU
        # precision matches the pure-JAX reference; pass precision=HIGHEST if
        # strict parity with PyTorch CPU/GPU f32 numerics were ever required.
        h = jnp.dot(h.astype(w.dtype), w,
                    preferred_element_type=jnp.float32) + b
        if l < num_layers - 1:
            h = jnp.maximum(h, 0.0)
            # Dropout: identity in eval mode (module semantics reproduced).
    o_ref[...] = h.astype(o_ref.dtype)


def _tpu_info():
    """(tensorcores_per_chip, vmem_byte_budget) for the local TPU generation."""
    try:
        kind = jax.devices()[0].device_kind.lower()
    except Exception:
        kind = ""
    if "v7" in kind or "7x" in kind:
        # v7x: 2 TensorCores/chip, 64 MiB physical VMEM per TC.
        return 2, 48 * 2**20
    # v5e / v6e (and older): 1 TC/chip, 128 MiB physical VMEM.
    return 1, 64 * 2**20


def _padded_bytes(shape, dtype):
    """Bytes a 2-D block occupies in VMEM (last dim pads to 128 lanes,
    second-to-last pads to the sublane tile for the dtype)."""
    itemsize = jnp.dtype(dtype).itemsize
    sublane = 8 * max(1, 4 // itemsize)          # 8 for f32, 16 for bf16
    r, c = shape
    r_pad = -(-r // sublane) * sublane
    c_pad = -(-c // 128) * 128
    return r_pad * c_pad * itemsize


def _vmem_estimate(tile_n, c_in, dims, compute_dtype, out_dtype):
    """Rough per-grid-step VMEM footprint (conservatively assumes the resident
    weights/biases are double-buffered)."""
    out_dim = dims[-1][1]
    est = 2 * _padded_bytes((tile_n, c_in), compute_dtype)     # x tile, 2 bufs
    est += 2 * _padded_bytes((tile_n, out_dim), out_dtype)     # out tile, 2 bufs
    for ci, co in dims:
        est += 2 * _padded_bytes((ci, co), compute_dtype)      # weights
        est += 2 * _padded_bytes((1, co), jnp.float32)         # biases
    widest = max([c_in] + [co for _, co in dims])
    est += 2 * _padded_bytes((tile_n, widest), jnp.float32)    # live f32 interms
    return est


def _pick_tile_n(n, c_in, dims, compute_dtype, out_dtype, num_tc, vmem_budget):
    """Largest power-of-two row tile whose working set fits ~70% of the VMEM
    budget, clamped to the problem size.  Only multi-TC chips (v7x) shrink the
    tile further so both TensorCores get at least one grid step."""
    target = int(0.7 * vmem_budget)
    tile = 8
    for cand in (8192, 4096, 2048, 1024, 512, 256, 128, 64, 32, 16, 8):
        if _vmem_estimate(cand, c_in, dims, compute_dtype, out_dtype) <= target:
            tile = cand
            break
    if tile >= n:
        tile = n                      # full-dim block is always a legal shape
    if num_tc > 1:
        # v7x: feed both TensorCores; keep tiles a multiple of 8 sublanes.
        while pl.cdiv(n, tile) < num_tc and tile >= 16 and (tile // 2) % 8 == 0:
            tile //= 2
    return tile


def _resident_spec(shape, single_buffer):
    """Full-array resident block (constant index map); single-buffered when
    supported so residents don't pay the double-buffer VMEM tax."""
    idx_map = lambda i: (0, 0)
    if single_buffer and hasattr(pl, "Buffered"):
        try:
            return pl.BlockSpec(shape, idx_map, pipeline_mode=pl.Buffered(1))
        except (TypeError, ValueError):
            pass
    return pl.BlockSpec(shape, idx_map)


def mlp_forward(x, params, adj_t=None, *, tile_n=None,
                compute_dtype=jnp.float32, out_dtype=None,
                single_buffer_weights=True):
    """Fused forward pass of `mlp_model`.

    `adj_t` is accepted but unused, matching the PyTorch module whose forward
    ignores it.  `compute_dtype=bf16` halves the x/W HBM reads;
    `out_dtype=bf16` halves the output writeback (both keep f32 accumulation).
    """
    del adj_t  # unused by the module's forward
    n, c_in = x.shape
    num_layers = len(params)
    dims = [(w.shape[0], w.shape[1]) for (w, _) in params]
    out_dim = dims[-1][1]
    if out_dtype is None:
        out_dtype = x.dtype

    num_tc, vmem_budget = _tpu_info()
    if tile_n is None:
        tile_n = _pick_tile_n(n, c_in, dims, compute_dtype, out_dtype,
                              num_tc, vmem_budget)
    assert tile_n == n or tile_n % 8 == 0, (n, tile_n)
    grid = (pl.cdiv(n, tile_n),)

    # Cast activations/weights once at the JAX level; biases stay f32.
    x_c = x.astype(compute_dtype)
    flat_params = []
    for (w, b) in params:
        flat_params.append(w.astype(compute_dtype))
        flat_params.append(b.astype(jnp.float32).reshape(1, -1))

    # Advisory cost hint for XLA's scheduler around the custom call.
    flops = 2 * n * sum(ci * co for ci, co in dims)
    bytes_accessed = (x_c.size * x_c.dtype.itemsize
                      + sum(int(p.size) * p.dtype.itemsize for p in flat_params)
                      + n * out_dim * jnp.dtype(out_dtype).itemsize)
    cost = pl.CostEstimate(flops=int(flops), transcendentals=0,
                           bytes_accessed=int(bytes_accessed))

    kernel = functools.partial(fused_mlp_kernel, num_layers=num_layers)

    def call(single_buf):
        in_specs = [pl.BlockSpec((tile_n, c_in), lambda i: (i, 0))]
        for (ci, co) in dims:
            in_specs.append(_resident_spec((ci, co), single_buf))
            in_specs.append(_resident_spec((1, co), single_buf))
        return pl.pallas_call(
            kernel,
            out_shape=jax.ShapeDtypeStruct((n, out_dim), out_dtype),
            grid=grid,
            in_specs=in_specs,
            out_specs=pl.BlockSpec((tile_n, out_dim), lambda i: (i, 0)),
            compiler_params=pltpu.CompilerParams(
                dimension_semantics=("parallel",),
                vmem_limit_bytes=int(vmem_budget)),
            cost_estimate=cost,
        )(x_c, *flat_params)

    try:
        return call(single_buffer_weights)
    except Exception:
        if not single_buffer_weights:
            raise
        # Fallback: if this JAX/Mosaic build rejects pipeline_mode on the
        # grid-pipelined pallas_call path, default double-buffered residents
        # are still correct (just a little more VMEM).
        return call(False)


def init_mlp_params(key, in_channels, hidden_channels, out_channels,
                    num_layers):
    """Layer shapes exactly as in mlp_model.__init__.

    num_layers == 1 : Linear(in, hidden)
    num_layers >= 2 : Linear(in, hidden), Linear(hidden, hidden) x (L-2),
                      Linear(hidden, out)
    Weights stored as (fan_in, fan_out) so the kernel computes x @ W + b.
    """
    if num_layers == 1:
        dims = [(in_channels, hidden_channels)]
    else:
        dims = ([(in_channels, hidden_channels)]
                + [(hidden_channels, hidden_channels)] * (num_layers - 2)
                + [(hidden_channels, out_channels)])
    params = []
    for (ci, co) in dims:
        key, kw, kb = jax.random.split(key, 3)
        bound = 1.0 / (ci ** 0.5)  # torch.nn.Linear default init range
        w = jax.random.uniform(kw, (ci, co), jnp.float32, -bound, bound)
        b = jax.random.uniform(kb, (1, co), jnp.float32, -bound, bound)
        params.append((w, b))
    return params


def mlp_forward_ref(x, params):
    """Pure-JAX reference (eval mode: dropout = identity)."""
    num_layers = len(params)
    for l, (w, b) in enumerate(params):
        x = x @ w + b
        if l < num_layers - 1:
            x = jnp.maximum(x, 0.0)
    return x


if __name__ == "__main__":
    # Small shapes consistent with the module.
    N = 256                  # rows (nodes / batch)
    in_channels = 16
    hidden_channels = 32
    out_channels = 16
    num_layers = 3
    dropout = 0.5            # eval mode -> identity

    key = jax.random.PRNGKey(0)
    kx, kp = jax.random.split(key)
    x = jax.random.normal(kx, (N, in_channels), jnp.float32)
    params = init_mlp_params(kp, in_channels, hidden_channels,
                             out_channels, num_layers)

    ref = mlp_forward_ref(x, params)

    # f32 path: strict parity with the pure-JAX reference.
    out = jax.block_until_ready(mlp_forward(x, params))
    assert out.shape == (N, out_channels)
    assert jnp.allclose(out, ref, atol=1e-4, rtol=1e-4), "f32 mismatch vs reference"

    # bf16 compute + bf16 output path (f32 accumulation): halves both the
    # x/W HBM reads and the output writeback.
    out_bf16 = jax.block_until_ready(
        mlp_forward(x, params, compute_dtype=jnp.bfloat16,
                    out_dtype=jnp.bfloat16))
    assert out_bf16.shape == (N, out_channels)
    assert jnp.allclose(out_bf16.astype(jnp.float32), ref,
                        atol=1e-1, rtol=1e-1), \
        "bf16 path deviates too far from reference"

    print("KERNEL_OK")
</pallas_src>

<mosaic_0001>
module attributes {stable_mosaic.version = 11 : i64} {
  func.func @fused_mlp_kernel(%arg0: i32, %arg1: memref<256x16xf32, #tpu.memory_space<vmem>>, %arg2: memref<16x32xf32, #tpu.memory_space<vmem>>, %arg3: memref<1x32xf32, #tpu.memory_space<vmem>>, %arg4: memref<32x32xf32, #tpu.memory_space<vmem>>, %arg5: memref<1x32xf32, #tpu.memory_space<vmem>>, %arg6: memref<32x16xf32, #tpu.memory_space<vmem>>, %arg7: memref<1x16xf32, #tpu.memory_space<vmem>>, %arg8: memref<256x16xf32, #tpu.memory_space<vmem>>) attributes {dimension_semantics = [#tpu.dimension_semantics<parallel>], iteration_bounds = array<i64: 1>, scalar_prefetch = 0 : i64, scratch_operands = 0 : i64, tpu.core_type = #tpu.core_type<tc>, window_params = [{transform_indices = @transform_0, window_bounds = array<i64: 256, 16>}, {pipeline_mode = #tpu.pipeline_mode<synchronous>, transform_indices = @transform_1, window_bounds = array<i64: 16, 32>}, {pipeline_mode = #tpu.pipeline_mode<synchronous>, transform_indices = @transform_2, window_bounds = array<i64: 1, 32>}, {pipeline_mode = #tpu.pipeline_mode<synchronous>, transform_indices = @transform_3, window_bounds = array<i64: 32, 32>}, {pipeline_mode = #tpu.pipeline_mode<synchronous>, transform_indices = @transform_4, window_bounds = array<i64: 1, 32>}, {pipeline_mode = #tpu.pipeline_mode<synchronous>, transform_indices = @transform_5, window_bounds = array<i64: 32, 16>}, {pipeline_mode = #tpu.pipeline_mode<synchronous>, transform_indices = @transform_6, window_bounds = array<i64: 1, 16>}, {transform_indices = @transform_7, window_bounds = array<i64: 256, 16>}]} {
    %c0 = arith.constant 0 : index
    %c0_0 = arith.constant 0 : index
    %0 = vector.load %arg1[%c0, %c0_0] : memref<256x16xf32, #tpu.memory_space<vmem>>, vector<256x16xf32>
    %c0_1 = arith.constant 0 : index
    %c0_2 = arith.constant 0 : index
    %1 = vector.load %arg2[%c0_1, %c0_2] : memref<16x32xf32, #tpu.memory_space<vmem>>, vector<16x32xf32>
    %c0_3 = arith.constant 0 : index
    %c0_4 = arith.constant 0 : index
    %2 = vector.load %arg3[%c0_3, %c0_4] : memref<1x32xf32, #tpu.memory_space<vmem>>, vector<1x32xf32>
    %cst = arith.constant dense<0.000000e+00> : vector<256x32xf32>
    %3 = tpu.matmul %0, %1, %cst {dimension_numbers = #tpu.dot_dimension_numbers<[1], [0], [0], [1], [0, 0, 1, 1], [], []>} : vector<256x16xf32>, vector<16x32xf32>, vector<256x32xf32> -> vector<256x32xf32>
    %4 = vector.broadcast %2 : vector<1x32xf32> to vector<256x32xf32>
    %5 = arith.addf %3, %4 : vector<256x32xf32>
    %cst_5 = arith.constant 0.000000e+00 : f32
    %6 = vector.broadcast %cst_5 : f32 to vector<256x32xf32>
    %7 = arith.maximumf %5, %6 : vector<256x32xf32>
    %c0_6 = arith.constant 0 : index
    %c0_7 = arith.constant 0 : index
    %8 = vector.load %arg4[%c0_6, %c0_7] : memref<32x32xf32, #tpu.memory_space<vmem>>, vector<32x32xf32>
    %c0_8 = arith.constant 0 : index
    %c0_9 = arith.constant 0 : index
    %9 = vector.load %arg5[%c0_8, %c0_9] : memref<1x32xf32, #tpu.memory_space<vmem>>, vector<1x32xf32>
    %cst_10 = arith.constant dense<0.000000e+00> : vector<256x32xf32>
    %10 = tpu.matmul %7, %8, %cst_10 {dimension_numbers = #tpu.dot_dimension_numbers<[1], [0], [0], [1], [0, 0, 1, 1], [], []>} : vector<256x32xf32>, vector<32x32xf32>, vector<256x32xf32> -> vector<256x32xf32>
    %11 = vector.broadcast %9 : vector<1x32xf32> to vector<256x32xf32>
    %12 = arith.addf %10, %11 : vector<256x32xf32>
    %cst_11 = arith.constant 0.000000e+00 : f32
    %13 = vector.broadcast %cst_11 : f32 to vector<256x32xf32>
    %14 = arith.maximumf %12, %13 : vector<256x32xf32>
    %c0_12 = arith.constant 0 : index
    %c0_13 = arith.constant 0 : index
    %15 = vector.load %arg6[%c0_12, %c0_13] : memref<32x16xf32, #tpu.memory_space<vmem>>, vector<32x16xf32>
    %c0_14 = arith.constant 0 : index
    %c0_15 = arith.constant 0 : index
    %16 = vector.load %arg7[%c0_14, %c0_15] : memref<1x16xf32, #tpu.memory_space<vmem>>, vector<1x16xf32>
    %cst_16 = arith.constant dense<0.000000e+00> : vector<256x16xf32>
    %17 = tpu.matmul %14, %15, %cst_16 {dimension_numbers = #tpu.dot_dimension_numbers<[1], [0], [0], [1], [0, 0, 1, 1], [], []>} : vector<256x32xf32>, vector<32x16xf32>, vector<256x16xf32> -> vector<256x16xf32>
    %18 = vector.broadcast %16 : vector<1x16xf32> to vector<256x16xf32>
    %19 = arith.addf %17, %18 : vector<256x16xf32>
    %c0_17 = arith.constant 0 : index
    %c0_18 = arith.constant 0 : index
    %20 = vector.load %arg8[%c0_17, %c0_18] : memref<256x16xf32, #tpu.memory_space<vmem>>, vector<256x16xf32>
    tpu.vector_store %arg8[%c0_17, %c0_18], %19 {strides = array<i32>} : memref<256x16xf32, #tpu.memory_space<vmem>>, vector<256x16xf32>,
    return
  }
  func.func @transform_0(%arg0: i32) -> (i32, i32) {
    %c0_i32 = arith.constant 0 : i32
    %c0_i32_0 = arith.constant 0 : i32
    return %arg0, %c0_i32 : i32, i32
  }
  func.func @transform_1(%arg0: i32) -> (i32, i32) {
    %c0_i32 = arith.constant 0 : i32
    %c0_i32_0 = arith.constant 0 : i32
    %c0_i32_1 = arith.constant 0 : i32
    return %c0_i32, %c0_i32_0 : i32, i32
  }
  func.func @transform_2(%arg0: i32) -> (i32, i32) {
    %c0_i32 = arith.constant 0 : i32
    %c0_i32_0 = arith.constant 0 : i32
    %c0_i32_1 = arith.constant 0 : i32
    return %c0_i32, %c0_i32_0 : i32, i32
  }
  func.func @transform_3(%arg0: i32) -> (i32, i32) {
    %c0_i32 = arith.constant 0 : i32
    %c0_i32_0 = arith.constant 0 : i32
    %c0_i32_1 = arith.constant 0 : i32
    return %c0_i32, %c0_i32_0 : i32, i32
  }
  func.func @transform_4(%arg0: i32) -> (i32, i32) {
    %c0_i32 = arith.constant 0 : i32
    %c0_i32_0 = arith.constant 0 : i32
    %c0_i32_1 = arith.constant 0 : i32
    return %c0_i32, %c0_i32_0 : i32, i32
  }
  func.func @transform_5(%arg0: i32) -> (i32, i32) {
    %c0_i32 = arith.constant 0 : i32
    %c0_i32_0 = arith.constant 0 : i32
    %c0_i32_1 = arith.constant 0 : i32
    return %c0_i32, %c0_i32_0 : i32, i32
  }
  func.func @transform_6(%arg0: i32) -> (i32, i32) {
    %c0_i32 = arith.constant 0 : i32
    %c0_i32_0 = arith.constant 0 : i32
    %c0_i32_1 = arith.constant 0 : i32
    return %c0_i32, %c0_i32_0 : i32, i32
  }
  func.func @transform_7(%arg0: i32) -> (i32, i32) {
    %c0_i32 = arith.constant 0 : i32
    %c0_i32_0 = arith.constant 0 : i32
    return %arg0, %c0_i32 : i32, i32
  }
}

module attributes {stable_mosaic.version = 11 : i64} {
  func.func @fused_mlp_kernel(%arg0: i32, %arg1: memref<256x16xf32, #tpu.memory_space<vmem>>, %arg2: memref<16x32xf32, #tpu.memory_space<vmem>>, %arg3: memref<1x32xf32, #tpu.memory_space<vmem>>, %arg4: memref<32x32xf32, #tpu.memory_space<vmem>>, %arg5: memref<1x32xf32, #tpu.memory_space<vmem>>, %arg6: memref<32x16xf32, #tpu.memory_space<vmem>>, %arg7: memref<1x16xf32, #tpu.memory_space<vmem>>, %arg8: memref<256x16xf32, #tpu.memory_space<vmem>>) attributes {dimension_semantics = [#tpu.dimension_semantics<parallel>], iteration_bounds = array<i64: 1>, scalar_prefetch = 0 : i64, scratch_operands = 0 : i64, tpu.core_type = #tpu.core_type<tc>, window_params = [{transform_indices = @transform_0, window_bounds = array<i64: 256, 16>}, {pipeline_mode = #tpu.pipeline_mode<synchronous>, transform_indices = @transform_1, window_bounds = array<i64: 16, 32>}, {pipeline_mode = #tpu.pipeline_mode<synchronous>, transform_indices = @transform_2, window_bounds = array<i64: 1, 32>}, {pipeline_mode = #tpu.pipeline_mode<synchronous>, transform_indices = @transform_3, window_bounds = array<i64: 32, 32>}, {pipeline_mode = #tpu.pipeline_mode<synchronous>, transform_indices = @transform_4, window_bounds = array<i64: 1, 32>}, {pipeline_mode = #tpu.pipeline_mode<synchronous>, transform_indices = @transform_5, window_bounds = array<i64: 32, 16>}, {pipeline_mode = #tpu.pipeline_mode<synchronous>, transform_indices = @transform_6, window_bounds = array<i64: 1, 16>}, {transform_indices = @transform_7, window_bounds = array<i64: 256, 16>}]} {
    %c0 = arith.constant 0 : index
    %c0_0 = arith.constant 0 : index
    %0 = vector.load %arg1[%c0, %c0_0] : memref<256x16xf32, #tpu.memory_space<vmem>>, vector<256x16xf32>
    %c0_1 = arith.constant 0 : index
    %c0_2 = arith.constant 0 : index
    %1 = vector.load %arg2[%c0_1, %c0_2] : memref<16x32xf32, #tpu.memory_space<vmem>>, vector<16x32xf32>
    %c0_3 = arith.constant 0 : index
    %c0_4 = arith.constant 0 : index
    %2 = vector.load %arg3[%c0_3, %c0_4] : memref<1x32xf32, #tpu.memory_space<vmem>>, vector<1x32xf32>
    %cst = arith.constant dense<0.000000e+00> : vector<256x32xf32>
    %3 = tpu.matmul %0, %1, %cst {dimension_numbers = #tpu.dot_dimension_numbers<[1], [0], [0], [1], [0, 0, 1, 1], [], []>} : vector<256x16xf32>, vector<16x32xf32>, vector<256x32xf32> -> vector<256x32xf32>
    %4 = vector.broadcast %2 : vector<1x32xf32> to vector<256x32xf32>
    %5 = arith.addf %3, %4 : vector<256x32xf32>
    %cst_5 = arith.constant 0.000000e+00 : f32
    %6 = vector.broadcast %cst_5 : f32 to vector<256x32xf32>
    %7 = arith.maximumf %5, %6 : vector<256x32xf32>
    %c0_6 = arith.constant 0 : index
    %c0_7 = arith.constant 0 : index
    %8 = vector.load %arg4[%c0_6, %c0_7] : memref<32x32xf32, #tpu.memory_space<vmem>>, vector<32x32xf32>
    %c0_8 = arith.constant 0 : index
    %c0_9 = arith.constant 0 : index
    %9 = vector.load %arg5[%c0_8, %c0_9] : memref<1x32xf32, #tpu.memory_space<vmem>>, vector<1x32xf32>
    %cst_10 = arith.constant dense<0.000000e+00> : vector<256x32xf32>
    %10 = tpu.matmul %7, %8, %cst_10 {dimension_numbers = #tpu.dot_dimension_numbers<[1], [0], [0], [1], [0, 0, 1, 1], [], []>} : vector<256x32xf32>, vector<32x32xf32>, vector<256x32xf32> -> vector<256x32xf32>
    %11 = vector.broadcast %9 : vector<1x32xf32> to vector<256x32xf32>
    %12 = arith.addf %10, %11 : vector<256x32xf32>
    %cst_11 = arith.constant 0.000000e+00 : f32
    %13 = vector.broadcast %cst_11 : f32 to vector<256x32xf32>
    %14 = arith.maximumf %12, %13 : vector<256x32xf32>
    %c0_12 = arith.constant 0 : index
    %c0_13 = arith.constant 0 : index
    %15 = vector.load %arg6[%c0_12, %c0_13] : memref<32x16xf32, #tpu.memory_space<vmem>>, vector<32x16xf32>
    %c0_14 = arith.constant 0 : index
    %c0_15 = arith.constant 0 : index
    %16 = vector.load %arg7[%c0_14, %c0_15] : memref<1x16xf32, #tpu.memory_space<vmem>>, vector<1x16xf32>
    %cst_16 = arith.constant dense<0.000000e+00> : vector<256x16xf32>
    %17 = tpu.matmul %14, %15, %cst_16 {dimension_numbers = #tpu.dot_dimension_numbers<[1], [0], [0], [1], [0, 0, 1, 1], [], []>} : vector<256x32xf32>, vector<32x16xf32>, vector<256x16xf32> -> vector<256x16xf32>
    %18 = vector.broadcast %16 : vector<1x16xf32> to vector<256x16xf32>
    %19 = arith.addf %17, %18 : vector<256x16xf32>
    %c0_17 = arith.constant 0 : index
    %c0_18 = arith.constant 0 : index
    %20 = vector.load %arg8[%c0_17, %c0_18] : memref<256x16xf32, #tpu.memory_space<vmem>>, vector<256x16xf32>
    tpu.vector_store %arg8[%c0_17, %c0_18], %19 {strides = array<i32>} : memref<256x16xf32, #tpu.memory_space<vmem>>, vector<256x16xf32>,
    return
  }
  func.func @transform_0(%arg0: i32) -> (i32, i32) {
    %c0_i32 = arith.constant 0 : i32
    %c0_i32_0 = arith.constant 0 : i32
    return %arg0, %c0_i32 : i32, i32
  }
  func.func @transform_1(%arg0: i32) -> (i32, i32) {
    %c0_i32 = arith.constant 0 : i32
    %c0_i32_0 = arith.constant 0 : i32
    %c0_i32_1 = arith.constant 0 : i32
    return %c0_i32, %c0_i32_0 : i32, i32
  }
  func.func @transform_2(%arg0: i32) -> (i32, i32) {
    %c0_i32 = arith.constant 0 : i32
    %c0_i32_0 = arith.constant 0 : i32
    %c0_i32_1 = arith.constant 0 : i32
    return %c0_i32, %c0_i32_0 : i32, i32
  }
  func.func @transform_3(%arg0: i32) -> (i32, i32) {
    %c0_i32 = arith.constant 0 : i32
    %c0_i32_0 = arith.constant 0 : i32
    %c0_i32_1 = arith.constant 0 : i32
    return %c0_i32, %c0_i32_0 : i32, i32
  }
  func.func @transform_4(%arg0: i32) -> (i32, i32) {
    %c0_i32 = arith.constant 0 : i32
    %c0_i32_0 = arith.constant 0 : i32
    %c0_i32_1 = arith.constant 0 : i32
    return %c0_i32, %c0_i32_0 : i32, i32
  }
  func.func @transform_5(%arg0: i32) -> (i32, i32) {
    %c0_i32 = arith.constant 0 : i32
    %c0_i32_0 = arith.constant 0 : i32
    %c0_i32_1 = arith.constant 0 : i32
    return %c0_i32, %c0_i32_0 : i32, i32
  }
  func.func @transform_6(%arg0: i32) -> (i32, i32) {
    %c0_i32 = arith.constant 0 : i32
    %c0_i32_0 = arith.constant 0 : i32
    %c0_i32_1 = arith.constant 0 : i32
    return %c0_i32, %c0_i32_0 : i32, i32
  }
  func.func @transform_7(%arg0: i32) -> (i32, i32) {
    %c0_i32 = arith.constant 0 : i32
    %c0_i32_0 = arith.constant 0 : i32
    return %arg0, %c0_i32 : i32, i32
  }
}

</mosaic_0001>

<bundles_post_ra>
// kernel: tpu_custom_call.1
= control target key start
LH: loop header
LB: loop body
LE: loop exit
PB: predicated region body
PF: predicated region fallthrough
CT: control target
= control target key end

     0   :  { %12 = vsyncpa [#allocation3], 0  ;;  %s2273_s0 = inlined_call_operand.hbm [shape: f32[256,16], index: 0, kind: input, shape index: {}]   ;;  %s2274_s1 = inlined_call_operand.hbm [shape: f32[16,32], index: 1, kind: input, shape index: {}]   ;;  %s2275_s2 = inlined_call_operand.hbm [shape: f32[1,32], index: 2, kind: input, shape index: {}]   ;;  %s2276_s3 = inlined_call_operand.hbm [shape: f32[32,32], index: 3, kind: input, shape index: {}]   ;;  %s2277_s4 = inlined_call_operand.hbm [shape: f32[1,32], index: 4, kind: input, shape index: {}]   ;;  %s2278_s5 = inlined_call_operand.hbm [shape: f32[32,16], index: 5, kind: input, shape index: {}]   ;;  %s2279_s6 = inlined_call_operand.hbm [shape: f32[1,16], index: 6, kind: input, shape index: {}]   ;;  %s2280_s7 = inlined_call_operand.hbm [shape: f32[256,16], index: 7, kind: output, shape index: {}]  }
   0x1   :  { %13 = vsyncpa [#allocation6], 0 }
   0x2   :  { %14 = vsyncpa [#allocation9], 0 }
   0x3   :  { %15 = vsyncpa [#allocation12], 0 }
   0x4   :  { %16 = vsyncpa [#allocation4], 0  ;;  %s1847_s24 = smov [#allocation5]   ;;  %s1848_s26 = smov [#allocation8]  }
   0x5   :  { %s34_s25 = sshll.u32 %s1847_s24, 4  ;;  %s56_s27 = sshll.u32 %s1848_s26, 4  ;;  %s35_s25 = int_to_ptr.vmem [resolvable:$true] %s34_s25  ;;  %s1897_s27 = int_to_ptr.vmem [resolvable:$true] %s56_s27 }
   0x6   :  { %s1661_s30 = scalar_lea.hbm %s2274_s1, 256 }
   0x7   :  { %p1662_p0 = scmp.ne.s32.totalorder %s2274_s1, %s1661_s30  ;;  %p1665_p1 = scmp.lt.u32.totalorder %s1661_s30, %s2274_s1 }
   0x9   :  { %p1667_p2 = pnand %p1665_p1, %p1662_p0 }
   0xb   :  { %1670 = shalt.err (!%p1667_p2)
}
   0xc   :  { %s1671_s12 = scalar_lea.vmem %s35_s25, 256  ;;  %p1676_p4 = scmp.lt.s32.totalorder %s35_s25, %s35_s25 }
   0xd   :  { %p1672_p3 = scmp.ne.s32.totalorder %s35_s25, %s1671_s12  ;;  %p1677_p5 = scmp.lt.s32.totalorder %s1671_s12, %s1671_s12 }
   0xf   :  { %p1678_p6 = por %p1677_p5, %p1676_p4 }
  0x11   :  { %p1679_p7 = pnand %p1678_p6, %p1672_p3 }
  0x13   :  { %1682 = shalt.err (!%p1679_p7)
}
  0x14   :  { %s1849_s13 = smov 128   ;;  %s1850_s14 = smov 8  }
  0x15   :  { %40 = dma.hbm_to_vmem [thread:$0]  %s2274_s1, 256, %s35_s25, [#allocation6], %s1849_s13, %s1849_s13, %s1850_s14  }
  0x16   :  { %s1683_s19 = scalar_lea.hbm %s2276_s3, 512 }
  0x17   :  { %p1684_p8 = scmp.ne.s32.totalorder %s2276_s3, %s1683_s19  ;;  %p1687_p9 = scmp.lt.u32.totalorder %s1683_s19, %s2276_s3 }
  0x19   :  { %p1689_p10 = pnand %p1687_p9, %p1684_p8 }
  0x1b   :  { %1692 = shalt.err (!%p1689_p10)
}
  0x1c   :  { %s1693_s24 = scalar_lea.vmem %s1897_s27, 512  ;;  %p1698_p12 = scmp.lt.s32.totalorder %s1897_s27, %s1897_s27 }
  0x1d   :  { %p1694_p11 = scmp.ne.s32.totalorder %s1897_s27, %s1693_s24  ;;  %p1699_p13 = scmp.lt.s32.totalorder %s1693_s24, %s1693_s24 }
  0x1f   :  { %p1700_p0 = por %p1699_p13, %p1698_p12 }
  0x21   :  { %p1701_p1 = pnand %p1700_p0, %p1694_p11 }
  0x23   :  { %1704 = shalt.err (!%p1701_p1)
}
  0x24   :  { %62 = dma.hbm_to_vmem [thread:$0]  %s2276_s3, 512, %s1897_s27, [#allocation9], %s1849_s13, %s1849_s13, %s1850_s14  }
  0x25   :  { %s1851_s26 = smov [#allocation11]   ;;  %s1852_s29 = smov [#allocation2]  }
  0x26   :  { %s78_s28 = sshll.u32 %s1851_s26, 4  ;;  %s22_s30 = sshll.u32 %s1852_s29, 4  ;;  %s79_s28 = int_to_ptr.vmem [resolvable:$true] %s78_s28  ;;  %s1934_s30 = int_to_ptr.vmem [resolvable:$true] %s22_s30 }
  0x27   :  { %s1705_s10 = scalar_lea.hbm %s2278_s5, 512 }
  0x28   :  { %p1706_p2 = scmp.ne.s32.totalorder %s2278_s5, %s1705_s10  ;;  %p1709_p3 = scmp.lt.u32.totalorder %s1705_s10, %s2278_s5 }
  0x2a   :  { %p1711_p4 = pnand %p1709_p3, %p1706_p2 }
  0x2c   :  { %1714 = shalt.err (!%p1711_p4)
}
  0x2d   :  { %s1715_s3 = scalar_lea.vmem %s79_s28, 512  ;;  %p1720_p6 = scmp.lt.s32.totalorder %s79_s28, %s79_s28 }
  0x2e   :  { %p1716_p5 = scmp.ne.s32.totalorder %s79_s28, %s1715_s3  ;;  %p1721_p7 = scmp.lt.s32.totalorder %s1715_s3, %s1715_s3 }
  0x30   :  { %p1722_p8 = por %p1721_p7, %p1720_p6 }
  0x32   :  { %p1723_p9 = pnand %p1722_p8, %p1716_p5 }
  0x34   :  { %1726 = shalt.err (!%p1723_p9)
}
  0x35   :  { %84 = dma.hbm_to_vmem [thread:$0]  %s2278_s5, 512, %s79_s28, [#allocation12], %s1849_s13, %s1849_s13, %s1850_s14  }
  0x36   :  { %s1727_s20 = scalar_lea.hbm %s2273_s0, 4096 }
  0x37   :  { %p1728_p10 = scmp.ne.s32.totalorder %s2273_s0, %s1727_s20  ;;  %p1731_p11 = scmp.lt.u32.totalorder %s1727_s20, %s2273_s0 }
  0x39   :  { %p1733_p12 = pnand %p1731_p11, %p1728_p10 }
  0x3b   :  { %1736 = shalt.err (!%p1733_p12)
}
  0x3c   :  { %s1737_s1 = scalar_lea.vmem %s1934_s30, 4096  ;;  %p1742_p0 = scmp.lt.s32.totalorder %s1934_s30, %s1934_s30 }
  0x3d   :  { %p1738_p13 = scmp.ne.s32.totalorder %s1934_s30, %s1737_s1  ;;  %p1743_p1 = scmp.lt.s32.totalorder %s1737_s1, %s1737_s1 }
  0x3f   :  { %p1744_p2 = por %p1743_p1, %p1742_p0 }
  0x41   :  { %p1745_p3 = pnand %p1744_p2, %p1738_p13 }
  0x43   :  { %1748 = shalt.err (!%p1745_p3)
}
  0x44   :  { %28 = dma.hbm_to_vmem [thread:$0]  %s2273_s0, 4096, %s1934_s30, [#allocation3], %s1849_s13, %s1849_s13, %s1850_s14  }
  0x45   :  { %s1853_s26 = smov [#allocation7]   ;;  %s1854_s29 = smov [#allocation10]  }
  0x46   :  { %s47_s28 = sshll.u32 %s1853_s26, 4  ;;  %s69_s8 = sshll.u32 %s1854_s29, 4  ;;  %s48_s28 = int_to_ptr.vmem [resolvable:$true] %s47_s28  ;;  %s70_s8 = int_to_ptr.vmem [resolvable:$true] %s69_s8 }
  0x47   :  { %s1749_s11 = scalar_lea.hbm %s2275_s2, 16 }
  0x48   :  { %p1750_p4 = scmp.ne.s32.totalorder %s2275_s2, %s1749_s11  ;;  %p1753_p5 = scmp.lt.u32.totalorder %s1749_s11, %s2275_s2 }
  0x4a   :  { %p1755_p6 = pnand %p1753_p5, %p1750_p4 }
  0x4c   :  { %1758 = shalt.err (!%p1755_p6)
}
  0x4d   :  { %s1759_s0 = scalar_lea.vmem %s48_s28, 16  ;;  %s1763_s30 = scalar_lea.vmem %s48_s28, 32 }
  0x4e   :  { %p1760_p7 = scmp.ne.s32.totalorder %s48_s28, %s1759_s0  ;;  %p1764_p8 = scmp.lt.s32.totalorder %s48_s28, %s48_s28 }
  0x4f   :  { %p1765_p9 = scmp.lt.s32.totalorder %s1763_s30, %s1759_s0 }
  0x51   :  { %p1766_p10 = por %p1765_p9, %p1764_p8 }
  0x53   :  { %p1767_p11 = pnand %p1766_p10, %p1760_p7 }
  0x55   :  { %1770 = shalt.err (!%p1767_p11)
}
  0x56   :  { %50 = dma.hbm_to_vmem [thread:$0]  %s2275_s2, 16, %s48_s28, [#allocation6]  }
  0x57   :  { %s1771_s20 = scalar_lea.hbm %s2277_s4, 16 }
  0x58   :  { %p1772_p12 = scmp.ne.s32.totalorder %s2277_s4, %s1771_s20  ;;  %p1775_p13 = scmp.lt.u32.totalorder %s1771_s20, %s2277_s4 }
  0x5a   :  { %p1777_p0 = pnand %p1775_p13, %p1772_p12 }
  0x5c   :  { %1780 = shalt.err (!%p1777_p0)
}
  0x5d   :  { %s1781_s1 = scalar_lea.vmem %s70_s8, 16  ;;  %s1785_s5 = scalar_lea.vmem %s70_s8, 32 }
  0x5e   :  { %p1782_p1 = scmp.ne.s32.totalorder %s70_s8, %s1781_s1  ;;  %p1786_p2 = scmp.lt.s32.totalorder %s70_s8, %s70_s8 }
  0x5f   :  { %p1787_p3 = scmp.lt.s32.totalorder %s1785_s5, %s1781_s1 }
  0x61   :  { %p1788_p4 = por %p1787_p3, %p1786_p2 }
  0x63   :  { %p1789_p5 = pnand %p1788_p4, %p1782_p1 }
  0x65   :  { %1792 = shalt.err (!%p1789_p5)
}
  0x66   :  { %72 = dma.hbm_to_vmem [thread:$0]  %s2277_s4, 16, %s70_s8, [#allocation9]  }
  0x67   :  { %s1855_s26 = smov [#allocation13]   ;;  %s1793_s10 = scalar_lea.hbm %s2279_s6, 16 }
  0x68   :  { %s91_s28 = sshll.u32 %s1855_s26, 4  ;;  %p1794_p6 = scmp.ne.s32.totalorder %s2279_s6, %s1793_s10  ;;  %s92_s28 = int_to_ptr.vmem [resolvable:$true] %s91_s28 }
  0x69   :  { %p1797_p7 = scmp.lt.u32.totalorder %s1793_s10, %s2279_s6 }
  0x6b   :  { %p1799_p8 = pnand %p1797_p7, %p1794_p6 }
  0x6d   :  { %1802 = shalt.err (!%p1799_p8)
}
  0x6e   :  { %s1803_s3 = scalar_lea.vmem %s92_s28, 16  ;;  %s1807_s4 = scalar_lea.vmem %s92_s28, 32 }
  0x6f   :  { %p1804_p9 = scmp.ne.s32.totalorder %s92_s28, %s1803_s3  ;;  %p1808_p10 = scmp.lt.s32.totalorder %s92_s28, %s92_s28 }
  0x70   :  { %p1809_p11 = scmp.lt.s32.totalorder %s1807_s4, %s1803_s3 }
  0x72   :  { %p1810_p12 = por %p1809_p11, %p1808_p10 }
  0x74   :  { %p1811_p13 = pnand %p1810_p12, %p1804_p9 }
  0x76   :  { %1814 = shalt.err (!%p1811_p13)
}
  0x77   :  { %94 = dma.hbm_to_vmem [thread:$0]  %s2279_s6, 16, %s92_s28, [#allocation12]  }
  0x78   :  { %1837 = dma.done.wait [#allocation3], 4096  }
  0x79   :  { %1838 = vsyncadd [#allocation3], 4294963200 }
  0x7a   :  { %1839 = dma.done.wait [#allocation6], 272  }
  0x7b   :  { %1840 = vsyncadd [#allocation6], 4294967024 }
  0x7c   :  { %1841 = dma.done.wait [#allocation9], 528  }
  0x7d   :  { %1842 = vsyncadd [#allocation9], 4294966768 }
  0x7e   :  { %1843 = dma.done.wait [#allocation12], 528  }
  0x7f   :  { %1844 = vsyncadd [#allocation12], 4294966768  ;;  %vm157_vm0 = vcmask 130048   ;;  %v148_v0 = vld [vmem:[#allocation5] sm:$0xff]  ;;  %v149_v1 = vld [vmem:[#allocation5 + $0x8] sm:$0xff]  ;;  %vm522_vm1 = vcmask 261120  }
  0x80   :  { %v116_v2 = vld [vmem:[#allocation2] sm:$0xff]  ;;  %v1629_v3 = vpack.c.bf16 %v149_v1, %v148_v0  ;;  %v117_v4 = vld [vmem:[#allocation2 + $0x8] sm:$0xff]  ;;  %v118_v5 = vld [vmem:[#allocation2 + $0x10] sm:$0xff]  ;;  %s1856_s6 = smov [#allocation14]  }
  0x81   :  { %1469 = vmatprep.mubr.msk.f32.mxu0 %vm157_vm0, %v116_v2  ;;  %v132_v6 = vld [vmem:[#allocation2 + $0x80] sm:$0xff]  ;;  %v133_v7 = vld [vmem:[#allocation2 + $0x88] sm:$0xff]  ;;  %v134_v8 = vld [vmem:[#allocation2 + $0x90] sm:$0xff]  ;;  %s1245_s30 = sshll.u32 %s1856_s6, 4  ;;  %s1246_s30 = int_to_ptr.vmem [resolvable:$true] %s1245_s30 }
  0x82   :  { %1630 = vmatprep.subr.bf16.mxu0 %v1629_v3  ;;  %1649 = vmatprep.subr.bf16.mxu1 %v1629_v3  ;;  %v119_v9 = vld [vmem:[#allocation2 + $0x18] sm:$0xff]  ;;  %v120_v10 = vld [vmem:[#allocation2 + $0x20] sm:$0xff]  ;;  %v121_v15 = vld [vmem:[#allocation2 + $0x28] sm:$0xff]  ;;  %s1815_s27 = scalar_lea.vmem %s1246_s30, 4096  ;;  %p1820_p1 = scmp.lt.s32.totalorder %s1246_s30, %s1246_s30 }
  0x83   :  { %1632 = vmatpush3.bf16.msra.mxu0 %v1629_v3  ;;  %1650 = vmatpush3.bf16.msra.mxu1 %v1629_v3  ;;  %v135_v11 = vld [vmem:[#allocation2 + $0x98] sm:$0xff]  ;;  %v136_v12 = vld [vmem:[#allocation2 + $0xa0] sm:$0xff]  ;;  %v514_v18 = vld [vmem:[#allocation8 + $0x18] sm:$0xff]  ;;  %p1816_p0 = scmp.ne.s32.totalorder %s1246_s30, %s1815_s27  ;;  %p1821_p2 = scmp.lt.s32.totalorder %s1815_s27, %s1815_s27 }
  0x84   :  { %1493 = vmatprep.mubr.msk.f32.mxu1 %vm157_vm0, %v132_v6  ;;  %v511_v13 = vld [vmem:[#allocation8] sm:$0xff]  ;;  %v512_v14 = vld [vmem:[#allocation8 + $0x8] sm:$0xff]  ;;  %v513_v17 = vld [vmem:[#allocation8 + $0x10] sm:$0xff] }
  0x85   :  { %v1633_v16 = vpack.c.bf16 %v512_v14, %v511_v13  ;;  %v122_v19 = vld [vmem:[#allocation2 + $0x30] sm:$0xff]  ;;  %v137_v20 = vld [vmem:[#allocation2 + $0xa8] sm:$0xff]  ;;  %v1637_v21 = vpack.c.bf16 %v514_v18, %v513_v17  ;;  %v123_v23 = vld [vmem:[#allocation2 + $0x38] sm:$0xff]  ;;  %p1822_p3 = por %p1821_p2, %p1820_p1 }
  0x86   :  { %1470 = vmatmul.mubr.msk.f32.vlgmr.msra.gmra.mrb[0].mxu0 %vm157_vm0, %v117_v4  ;;  %1494 = vmatmul.mubr.msk.f32.vlgmr.msra.gmra.mrb[0].mxu1 %vm157_vm0, %v133_v7  ;;  %v138_v22 = vld [vmem:[#allocation2 + $0xb0] sm:$0xff]  ;;  %v124_v24 = vld [vmem:[#allocation2 + $0x40] sm:$0xff]  ;;  %v139_v25 = vld [vmem:[#allocation2 + $0xb8] sm:$0xff] }
  0x87   :  { %1472 = vmatprep.mubr.msk.f32.mxu0 %vm157_vm0, %v118_v5  ;;  %1496 = vmatprep.mubr.msk.f32.mxu1 %vm157_vm0, %v134_v8  ;;  %v140_v26 = vld [vmem:[#allocation2 + $0xc0] sm:$0xff]  ;;  %v125_v27 = vld [vmem:[#allocation2 + $0x48] sm:$0xff]  ;;  %v126_v28 = vld [vmem:[#allocation2 + $0x50] sm:$0xff]  ;;  %p1823_p4 = pnand %p1822_p3, %p1816_p0 }
  0x88   :  { %1634 = vmatprep.subr.bf16.mxu1 %v1633_v16  ;;  %v141_v29 = vld [vmem:[#allocation2 + $0xc8] sm:$0xff]  ;;  %v142_v30 = vld [vmem:[#allocation2 + $0xd0] sm:$0xff]  ;;  %v127_v31 = vld [vmem:[#allocation2 + $0x58] sm:$0xff] }
  0x89   :  { %1636 = vmatpush3.bf16.msra.mxu1 %v1633_v16  ;;  %v128_v32 = vld [vmem:[#allocation2 + $0x60] sm:$0xff]  ;;  %v143_v33 = vld [vmem:[#allocation2 + $0xd8] sm:$0xff]  ;;  %v129_v35 = vld [vmem:[#allocation2 + $0x68] sm:$0xff] }
  0x8a   :  { %1473 = vmatmul.mubr.msk.f32.gmra.mrb[2].mxu0 %vm157_vm0, %v119_v9  ;;  %1497 = vmatmul.mubr.msk.f32.gmra.mrb[2].mxu1 %vm157_vm0, %v135_v11  ;;  %v144_v34 = vld [vmem:[#allocation2 + $0xe0] sm:$0xff]  ;;  %v130_v36 = vld [vmem:[#allocation2 + $0x70] sm:$0xff]  ;;  %v145_v37 = vld [vmem:[#allocation2 + $0xe8] sm:$0xff] }
  0x8b   :  { %1475 = vmatprep.mubr.msk.f32.mxu0 %vm157_vm0, %v120_v10  ;;  %1499 = vmatprep.mubr.msk.f32.mxu1 %vm157_vm0, %v136_v12  ;;  %v146_v38 = vld [vmem:[#allocation2 + $0xf0] sm:$0xff]  ;;  %v131_v39 = vld [vmem:[#allocation2 + $0x78] sm:$0xff]  ;;  %v878_v43 = vld [vmem:[#allocation11 + $0x10] sm:$0xff] }
  0x8c   :  { %1638 = vmatprep.subr.bf16.mxu1 %v1637_v21  ;;  %v147_v40 = vld [vmem:[#allocation2 + $0xf8] sm:$0xff]  ;;  %v879_v45 = vld [vmem:[#allocation11 + $0x18] sm:$0xff] }
  0x8d   :  { %1640 = vmatpush3.bf16.msra.mxu1 %v1637_v21  ;;  %v876_v41 = vld [vmem:[#allocation11] sm:$0xff]  ;;  %v877_v42 = vld [vmem:[#allocation11 + $0x8] sm:$0xff]  ;;  %v1645_v46 = vpack.c.bf16 %v879_v45, %v878_v43  ;;  %v2039_v47 = vld [vmem:[#allocation7] ss:$0 sm:$0xff] }
  0x8e   :  { %1476 = vmatmul.mubr.msk.f32.gmra.mrb[4].mxu0 %vm157_vm0, %v121_v15  ;;  %1500 = vmatmul.mubr.msk.f32.gmra.mrb[4].mxu1 %vm157_vm0, %v137_v20  ;;  %v1641_v44 = vpack.c.bf16 %v877_v42, %v876_v41 }
  0x8f   :  { %1478 = vmatprep.mubr.msk.f32.mxu0 %vm157_vm0, %v122_v19  ;;  %1502 = vmatprep.mubr.msk.f32.mxu1 %vm157_vm0, %v138_v22 }
  0x90   :  { %1642 = vmatprep.subr.bf16.mxu0 %v1641_v44 }
  0x91   :  { %1644 = vmatpush3.bf16.msra.mxu0 %v1641_v44 }
  0x92   :  { %1479 = vmatmul.mubr.msk.f32.gmra.mrb[6].mxu0 %vm157_vm0, %v123_v23  ;;  %1503 = vmatmul.mubr.msk.f32.gmra.mrb[6].mxu1 %vm157_vm0, %v139_v25 }
  0x93   :  { %1481 = vmatprep.mubr.msk.f32.mxu0 %vm157_vm0, %v124_v24  ;;  %1505 = vmatprep.mubr.msk.f32.mxu1 %vm157_vm0, %v140_v26 }
  0x94   :  { %1646 = vmatprep.subr.bf16.mxu0 %v1645_v46 }
  0x95   :  { %1648 = vmatpush3.bf16.msra.mxu0 %v1645_v46 }
  0x96   :  { %1482 = vmatmul.mubr.msk.f32.gmra.mrb[8].mxu0 %vm157_vm0, %v125_v27  ;;  %1506 = vmatmul.mubr.msk.f32.gmra.mrb[8].mxu1 %vm157_vm0, %v141_v29 }
  0x97   :  { %1484 = vmatprep.mubr.msk.f32.mxu0 %vm157_vm0, %v126_v28  ;;  %1508 = vmatprep.mubr.msk.f32.mxu1 %vm157_vm0, %v142_v30 }
  0x9a   :  { %1485 = vmatmul.mubr.msk.f32.gmra.mrb[10].mxu0 %vm157_vm0, %v127_v31  ;;  %1509 = vmatmul.mubr.msk.f32.gmra.mrb[10].mxu1 %vm157_vm0, %v143_v33 }
  0x9b   :  { %1487 = vmatprep.mubr.msk.f32.mxu0 %vm157_vm0, %v128_v32  ;;  %1511 = vmatprep.mubr.msk.f32.mxu1 %vm157_vm0, %v144_v34 }
  0x9e   :  { %1488 = vmatmul.mubr.msk.f32.gmra.mrb[12].mxu0 %vm157_vm0, %v129_v35  ;;  %1512 = vmatmul.mubr.msk.f32.gmra.mrb[12].mxu1 %vm157_vm0, %v145_v37 }
  0x9f   :  { %1490 = vmatprep.mubr.msk.f32.mxu0 %vm157_vm0, %v130_v36  ;;  %1514 = vmatprep.mubr.msk.f32.mxu1 %vm157_vm0, %v146_v38 }
  0xa2   :  { %1491 = vmatmul.mubr.msk.f32.gmra.mrb[14].mxu0 %vm157_vm0, %v131_v39  ;;  %1515 = vmatmul.mubr.msk.f32.gmra.mrb[14].mxu1 %vm157_vm0, %v147_v40 }
 0x159   :  { %v1471_v48 = vpop.f32.mrb[0].mxu0  ;;  %v2042_v51 = vpop.f32.mrb[0].mxu1 }
 0x15a   :  { %v326_v49 = vadd.f32 %v1471_v48, %v2039_v47  ;;  %v320_v50 = vpop.f32.mrb[1].mxu0  ;;  %v2045_v53 = vpop.f32.mrb[1].mxu1 }
 0x15b   :  { %v321_v52 = vadd.f32 %v2039_v47, %v320_v50  ;;  %v401_v40 = vadd.f32 %v2039_v47, %v2045_v53  ;;  %v406_v53 = vadd.f32 %v2042_v51, %v2039_v47 }
 0x15c   :  { %v480_v56 = vmax.f32 %v326_v49, 0.0 }
 0x15d   :  { %v479_v54 = vmax.f32 %v321_v52, 0.0  ;;  %v1474_v55 = vpop.f32.mrb[2].mxu0  ;;  %v2048_v59 = vpop.f32.mrb[2].mxu1  ;;  %v495_v49 = vmax.f32 %v401_v40, 0.0 }
 0x15e   :  { %v336_v57 = vadd.f32 %v1474_v55, %v2039_v47  ;;  %v330_v58 = vpop.f32.mrb[3].mxu0  ;;  %v2052_v61 = vpop.f32.mrb[3].mxu1 }
 0x15f   :  { %v331_v60 = vadd.f32 %v2039_v47, %v330_v58  ;;  %1525 = vmatprep.mubr.msk.f32.mxu1 %vm522_vm1, %v479_v54  ;;  %v411_v50 = vadd.f32 %v2039_v47, %v2052_v61 }
 0x160   :  { %1526 = vmatmul.mubr.msk.f32.vlgmr.msra.gmra.mrb[16].mxu1 %vm522_vm1, %v480_v56  ;;  %v482_v0 = vmax.f32 %v336_v57, 0.0  ;;  %v496_v56 = vmax.f32 %v406_v53, 0.0  ;;  %v416_v57 = vadd.f32 %v2048_v59, %v2039_v47 }
 0x161   :  { %v481_v62 = vmax.f32 %v331_v60, 0.0  ;;  %v1477_v63 = vpop.f32.mrb[4].mxu0  ;;  %v2056_v3 = vpop.f32.mrb[4].mxu1  ;;  %v497_v54 = vmax.f32 %v411_v50, 0.0 }
 0x162   :  { %v346_v1 = vadd.f32 %v1477_v63, %v2039_v47  ;;  %v340_v2 = vpop.f32.mrb[5].mxu0  ;;  %v420_v5 = vpop.f32.mrb[5].mxu1  ;;  %v498_v60 = vmax.f32 %v416_v57, 0.0  ;;  %v426_v61 = vadd.f32 %v2056_v3, %v2039_v47 }
 0x163   :  { %v341_v4 = vadd.f32 %v2039_v47, %v340_v2  ;;  %1528 = vmatprep.mubr.msk.f32.mxu1 %vm522_vm1, %v481_v62  ;;  %v421_v55 = vadd.f32 %v2039_v47, %v420_v5 }
 0x164   :  { %1529 = vmatmul.mubr.msk.f32.gmra.mrb[18].mxu1 %vm522_vm1, %v482_v0  ;;  %v484_v8 = vmax.f32 %v346_v1, 0.0  ;;  %v500_v0 = vmax.f32 %v426_v61, 0.0 }
 0x165   :  { %v483_v6 = vmax.f32 %v341_v4, 0.0  ;;  %v1480_v7 = vpop.f32.mrb[6].mxu0  ;;  %v2062_v11 = vpop.f32.mrb[6].mxu1  ;;  %v499_v58 = vmax.f32 %v421_v55, 0.0 }
 0x166   :  { %v356_v9 = vadd.f32 %v1480_v7, %v2039_v47  ;;  %v350_v10 = vpop.f32.mrb[7].mxu0  ;;  %v430_v13 = vpop.f32.mrb[7].mxu1  ;;  %v436_v59 = vadd.f32 %v2062_v11, %v2039_v47 }
 0x167   :  { %v351_v12 = vadd.f32 %v2039_v47, %v350_v10  ;;  %1531 = vmatprep.mubr.msk.f32.mxu1 %vm522_vm1, %v483_v6  ;;  %v431_v51 = vadd.f32 %v2039_v47, %v430_v13 }
 0x168   :  { %1532 = vmatmul.mubr.msk.f32.gmra.mrb[20].mxu1 %vm522_vm1, %v484_v8  ;;  %v486_v16 = vmax.f32 %v356_v9, 0.0  ;;  %v502_v4 = vmax.f32 %v436_v59, 0.0 }
 0x169   :  { %v485_v14 = vmax.f32 %v351_v12, 0.0  ;;  %v1483_v15 = vpop.f32.mrb[8].mxu0  ;;  %v2068_v19 = vpop.f32.mrb[8].mxu1  ;;  %v501_v62 = vmax.f32 %v431_v51, 0.0 }
 0x16a   :  { %v366_v17 = vadd.f32 %v1483_v15, %v2039_v47  ;;  %v360_v18 = vpop.f32.mrb[9].mxu0  ;;  %v440_v21 = vpop.f32.mrb[9].mxu1  ;;  %v446_v3 = vadd.f32 %v2068_v19, %v2039_v47 }
 0x16b   :  { %v361_v20 = vadd.f32 %v2039_v47, %v360_v18  ;;  %1534 = vmatprep.mubr.msk.f32.mxu1 %vm522_vm1, %v485_v14  ;;  %v441_v63 = vadd.f32 %v2039_v47, %v440_v21 }
 0x16c   :  { %1535 = vmatmul.mubr.msk.f32.gmra.mrb[22].mxu1 %vm522_vm1, %v486_v16  ;;  %v488_v24 = vmax.f32 %v366_v17, 0.0  ;;  %v504_v7 = vmax.f32 %v446_v3, 0.0  ;;  %v2126_v17 = vld [vmem:[#allocation10] ss:$0 sm:$0xff] }
 0x16d   :  { %v487_v22 = vmax.f32 %v361_v20, 0.0  ;;  %v1486_v23 = vpop.f32.mrb[10].mxu0  ;;  %v1510_v27 = vpop.f32.mrb[10].mxu1  ;;  %v503_v1 = vmax.f32 %v441_v63, 0.0 }
 0x16e   :  { %v376_v25 = vadd.f32 %v1486_v23, %v2039_v47  ;;  %v370_v26 = vpop.f32.mrb[11].mxu0  ;;  %v450_v29 = vpop.f32.mrb[11].mxu1  ;;  %v456_v8 = vadd.f32 %v1510_v27, %v2039_v47 }
 0x16f   :  { %v371_v28 = vadd.f32 %v2039_v47, %v370_v26  ;;  %1537 = vmatprep.mubr.msk.f32.mxu1 %vm522_vm1, %v487_v22  ;;  %v451_v2 = vadd.f32 %v2039_v47, %v450_v29 }
 0x170   :  { %1538 = vmatmul.mubr.msk.f32.gmra.mrb[24].mxu1 %vm522_vm1, %v488_v24  ;;  %v490_v32 = vmax.f32 %v376_v25, 0.0  ;;  %v506_v11 = vmax.f32 %v456_v8, 0.0 }
 0x171   :  { %v489_v30 = vmax.f32 %v371_v28, 0.0  ;;  %v1489_v31 = vpop.f32.mrb[12].mxu0  ;;  %v1513_v35 = vpop.f32.mrb[12].mxu1  ;;  %v505_v5 = vmax.f32 %v451_v2, 0.0 }
 0x172   :  { %v386_v33 = vadd.f32 %v1489_v31, %v2039_v47  ;;  %v380_v34 = vpop.f32.mrb[13].mxu0  ;;  %v460_v37 = vpop.f32.mrb[13].mxu1  ;;  %v466_v12 = vadd.f32 %v1513_v35, %v2039_v47 }
 0x173   :  { %v381_v36 = vadd.f32 %v2039_v47, %v380_v34  ;;  %1540 = vmatprep.mubr.msk.f32.mxu1 %vm522_vm1, %v489_v30  ;;  %v461_v6 = vadd.f32 %v2039_v47, %v460_v37 }
 0x174   :  { %1541 = vmatmul.mubr.msk.f32.gmra.mrb[26].mxu1 %vm522_vm1, %v490_v32  ;;  %v492_v41 = vmax.f32 %v386_v33, 0.0  ;;  %v508_v14 = vmax.f32 %v466_v12, 0.0 }
 0x175   :  { %v491_v38 = vmax.f32 %v381_v36, 0.0  ;;  %v1492_v39 = vpop.f32.mrb[14].mxu0  ;;  %v1516_v44 = vpop.f32.mrb[14].mxu1  ;;  %v507_v9 = vmax.f32 %v461_v6, 0.0 }
 0x176   :  { %v396_v42 = vadd.f32 %v1492_v39, %v2039_v47  ;;  %v390_v43 = vpop.f32.mrb[15].mxu0  ;;  %v470_v46 = vpop.f32.mrb[15].mxu1  ;;  %v476_v15 = vadd.f32 %v1516_v44, %v2039_v47 }
 0x177   :  { %v391_v45 = vadd.f32 %v2039_v47, %v390_v43  ;;  %1543 = vmatprep.mubr.msk.f32.mxu1 %vm522_vm1, %v491_v38  ;;  %v471_v10 = vadd.f32 %v2039_v47, %v470_v46 }
 0x178   :  { %1544 = vmatmul.mubr.msk.f32.gmra.mrb[28].mxu1 %vm522_vm1, %v492_v41  ;;  %v494_v52 = vmax.f32 %v396_v42, 0.0  ;;  %v510_v16 = vmax.f32 %v476_v15, 0.0 }
 0x179   :  { %v493_v48 = vmax.f32 %v391_v45, 0.0  ;;  %v509_v13 = vmax.f32 %v471_v10, 0.0 }
 0x17b   :  { %1546 = vmatprep.mubr.msk.f32.mxu1 %vm522_vm1, %v493_v48 }
 0x17c   :  { %1547 = vmatmul.mubr.msk.f32.gmra.mrb[30].mxu1 %vm522_vm1, %v494_v52 }
 0x17d   :  { %1549 = vmatprep.mubr.msk.f32.mxu1 %vm522_vm1, %v495_v49 }
 0x180   :  { %1550 = vmatmul.mubr.msk.f32.gmra.mrb[32].mxu1 %vm522_vm1, %v496_v56 }
 0x181   :  { %1552 = vmatprep.mubr.msk.f32.mxu1 %vm522_vm1, %v497_v54 }
 0x184   :  { %1553 = vmatmul.mubr.msk.f32.gmra.mrb[34].mxu1 %vm522_vm1, %v498_v60 }
 0x185   :  { %1555 = vmatprep.mubr.msk.f32.mxu1 %vm522_vm1, %v499_v58 }
 0x188   :  { %1556 = vmatmul.mubr.msk.f32.gmra.mrb[36].mxu1 %vm522_vm1, %v500_v0 }
 0x189   :  { %1558 = vmatprep.mubr.msk.f32.mxu1 %vm522_vm1, %v501_v62 }
 0x18c   :  { %1559 = vmatmul.mubr.msk.f32.gmra.mrb[38].mxu1 %vm522_vm1, %v502_v4 }
 0x18d   :  { %1561 = vmatprep.mubr.msk.f32.mxu1 %vm522_vm1, %v503_v1 }
 0x190   :  { %1562 = vmatmul.mubr.msk.f32.gmra.mrb[40].mxu1 %vm522_vm1, %v504_v7 }
 0x191   :  { %1564 = vmatprep.mubr.msk.f32.mxu1 %vm522_vm1, %v505_v5 }
 0x194   :  { %1565 = vmatmul.mubr.msk.f32.gmra.mrb[42].mxu1 %vm522_vm1, %v506_v11 }
 0x195   :  { %1567 = vmatprep.mubr.msk.f32.mxu1 %vm522_vm1, %v507_v9 }
 0x198   :  { %1568 = vmatmul.mubr.msk.f32.gmra.mrb[44].mxu1 %vm522_vm1, %v508_v14 }
 0x199   :  { %1570 = vmatprep.mubr.msk.f32.mxu1 %vm522_vm1, %v509_v13 }
 0x19c   :  { %1571 = vmatmul.mubr.msk.f32.gmra.mrb[46].mxu1 %vm522_vm1, %v510_v16 }
 0x233   :  { %v1527_v18 = vpop.f32.mrb[16].mxu1 }
 0x234   :  { %v691_v19 = vadd.f32 %v1527_v18, %v2126_v17  ;;  %v685_v20 = vpop.f32.mrb[17].mxu1 }
 0x235   :  { %v686_v21 = vadd.f32 %v2126_v17, %v685_v20 }
 0x236   :  { %v845_v24 = vmax.f32 %v691_v19, 0.0 }
 0x237   :  { %v844_v22 = vmax.f32 %v686_v21, 0.0  ;;  %v1530_v23 = vpop.f32.mrb[18].mxu1 }
 0x238   :  { %v701_v47 = vadd.f32 %v1530_v23, %v2126_v17  ;;  %v695_v25 = vpop.f32.mrb[19].mxu1 }
 0x239   :  { %v696_v26 = vadd.f32 %v2126_v17, %v695_v25  ;;  %1581 = vmatprep.mubr.msk.f32.mxu0 %vm522_vm1, %v844_v22 }
 0x23a   :  { %1582 = vmatmul.mubr.msk.f32.vlgmr.msra.gmra.mrb[16].mxu0 %vm522_vm1, %v845_v24  ;;  %v847_v29 = vmax.f32 %v701_v47, 0.0 }
 0x23b   :  { %v846_v27 = vmax.f32 %v696_v26, 0.0  ;;  %v1533_v28 = vpop.f32.mrb[20].mxu1 }
 0x23c   :  { %v711_v30 = vadd.f32 %v1533_v28, %v2126_v17  ;;  %v705_v31 = vpop.f32.mrb[21].mxu1 }
 0x23d   :  { %v706_v32 = vadd.f32 %v2126_v17, %v705_v31  ;;  %1584 = vmatprep.mubr.msk.f32.mxu0 %vm522_vm1, %v846_v27 }
 0x23e   :  { %1585 = vmatmul.mubr.msk.f32.gmra.mrb[18].mxu0 %vm522_vm1, %v847_v29  ;;  %v849_v35 = vmax.f32 %v711_v30, 0.0 }
 0x23f   :  { %v848_v33 = vmax.f32 %v706_v32, 0.0  ;;  %v1536_v34 = vpop.f32.mrb[22].mxu1 }
 0x240   :  { %v721_v36 = vadd.f32 %v1536_v34, %v2126_v17  ;;  %v715_v37 = vpop.f32.mrb[23].mxu1 }
 0x241   :  { %v716_v38 = vadd.f32 %v2126_v17, %v715_v37  ;;  %1587 = vmatprep.mubr.msk.f32.mxu0 %vm522_vm1, %v848_v33 }
 0x242   :  { %1588 = vmatmul.mubr.msk.f32.gmra.mrb[20].mxu0 %vm522_vm1, %v849_v35  ;;  %v851_v41 = vmax.f32 %v721_v36, 0.0 }
 0x243   :  { %v850_v39 = vmax.f32 %v716_v38, 0.0  ;;  %v1539_v40 = vpop.f32.mrb[24].mxu1 }
 0x244   :  { %v731_v42 = vadd.f32 %v1539_v40, %v2126_v17  ;;  %v725_v43 = vpop.f32.mrb[25].mxu1 }
 0x245   :  { %v726_v44 = vadd.f32 %v2126_v17, %v725_v43  ;;  %1590 = vmatprep.mubr.msk.f32.mxu0 %vm522_vm1, %v850_v39 }
 0x246   :  { %1591 = vmatmul.mubr.msk.f32.gmra.mrb[22].mxu0 %vm522_vm1, %v851_v41  ;;  %v853_v48 = vmax.f32 %v731_v42, 0.0 }
 0x247   :  { %v852_v45 = vmax.f32 %v726_v44, 0.0  ;;  %v1542_v46 = vpop.f32.mrb[26].mxu1 }
 0x248   :  { %v741_v49 = vadd.f32 %v1542_v46, %v2126_v17  ;;  %v735_v50 = vpop.f32.mrb[27].mxu1 }
 0x249   :  { %v736_v52 = vadd.f32 %v2126_v17, %v735_v50  ;;  %1593 = vmatprep.mubr.msk.f32.mxu0 %vm522_vm1, %v852_v45 }
 0x24a   :  { %1594 = vmatmul.mubr.msk.f32.gmra.mrb[24].mxu0 %vm522_vm1, %v853_v48  ;;  %v855_v55 = vmax.f32 %v741_v49, 0.0 }
 0x24b   :  { %v854_v53 = vmax.f32 %v736_v52, 0.0  ;;  %v1545_v54 = vpop.f32.mrb[28].mxu1  ;;  %v2192_v52 = vld [vmem:[#allocation13] ss:$0 sm:$0xff] }
 0x24c   :  { %v751_v56 = vadd.f32 %v1545_v54, %v2126_v17  ;;  %v745_v57 = vpop.f32.mrb[29].mxu1 }
 0x24d   :  { %v746_v58 = vadd.f32 %v2126_v17, %v745_v57  ;;  %1596 = vmatprep.mubr.msk.f32.mxu0 %vm522_vm1, %v854_v53 }
 0x24e   :  { %1597 = vmatmul.mubr.msk.f32.gmra.mrb[26].mxu0 %vm522_vm1, %v855_v55  ;;  %v857_v61 = vmax.f32 %v751_v56, 0.0 }
 0x24f   :  { %v856_v51 = vmax.f32 %v746_v58, 0.0  ;;  %v1548_v60 = vpop.f32.mrb[30].mxu1 }
 0x250   :  { %v761_v62 = vadd.f32 %v1548_v60, %v2126_v17  ;;  %v755_v63 = vpop.f32.mrb[31].mxu1 }
 0x251   :  { %v756_v0 = vadd.f32 %v2126_v17, %v755_v63  ;;  %1599 = vmatprep.mubr.msk.f32.mxu0 %vm522_vm1, %v856_v51 }
 0x252   :  { %1600 = vmatmul.mubr.msk.f32.gmra.mrb[28].mxu0 %vm522_vm1, %v857_v61  ;;  %v859_v2 = vmax.f32 %v761_v62, 0.0 }
 0x253   :  { %v858_v59 = vmax.f32 %v756_v0, 0.0  ;;  %v1551_v1 = vpop.f32.mrb[32].mxu1 }
 0x254   :  { %v771_v4 = vadd.f32 %v1551_v1, %v2126_v17  ;;  %v765_v3 = vpop.f32.mrb[33].mxu1 }
 0x255   :  { %v766_v5 = vadd.f32 %v2126_v17, %v765_v3  ;;  %1602 = vmatprep.mubr.msk.f32.mxu0 %vm522_vm1, %v858_v59 }
 0x256   :  { %1603 = vmatmul.mubr.msk.f32.gmra.mrb[30].mxu0 %vm522_vm1, %v859_v2  ;;  %v861_v8 = vmax.f32 %v771_v4, 0.0 }
 0x257   :  { %v860_v6 = vmax.f32 %v766_v5, 0.0  ;;  %v1554_v7 = vpop.f32.mrb[34].mxu1 }
 0x258   :  { %v781_v9 = vadd.f32 %v1554_v7, %v2126_v17  ;;  %v775_v10 = vpop.f32.mrb[35].mxu1 }
 0x259   :  { %v776_v11 = vadd.f32 %v2126_v17, %v775_v10  ;;  %1605 = vmatprep.mubr.msk.f32.mxu0 %vm522_vm1, %v860_v6 }
 0x25a   :  { %1606 = vmatmul.mubr.msk.f32.gmra.mrb[32].mxu0 %vm522_vm1, %v861_v8  ;;  %v863_v14 = vmax.f32 %v781_v9, 0.0 }
 0x25b   :  { %v862_v12 = vmax.f32 %v776_v11, 0.0  ;;  %v1557_v13 = vpop.f32.mrb[36].mxu1 }
 0x25c   :  { %v791_v15 = vadd.f32 %v1557_v13, %v2126_v17  ;;  %v785_v16 = vpop.f32.mrb[37].mxu1 }
 0x25d   :  { %v786_v18 = vadd.f32 %v2126_v17, %v785_v16  ;;  %1608 = vmatprep.mubr.msk.f32.mxu0 %vm522_vm1, %v862_v12 }
 0x25e   :  { %1609 = vmatmul.mubr.msk.f32.gmra.mrb[34].mxu0 %vm522_vm1, %v863_v14  ;;  %v865_v21 = vmax.f32 %v791_v15, 0.0 }
 0x25f   :  { %v864_v19 = vmax.f32 %v786_v18, 0.0  ;;  %v1560_v20 = vpop.f32.mrb[38].mxu1 }
 0x260   :  { %v801_v22 = vadd.f32 %v1560_v20, %v2126_v17  ;;  %v795_v23 = vpop.f32.mrb[39].mxu1 }
 0x261   :  { %v796_v24 = vadd.f32 %v2126_v17, %v795_v23  ;;  %1611 = vmatprep.mubr.msk.f32.mxu0 %vm522_vm1, %v864_v19 }
 0x262   :  { %1612 = vmatmul.mubr.msk.f32.gmra.mrb[36].mxu0 %vm522_vm1, %v865_v21  ;;  %v867_v26 = vmax.f32 %v801_v22, 0.0 }
 0x263   :  { %v866_v47 = vmax.f32 %v796_v24, 0.0  ;;  %v1563_v25 = vpop.f32.mrb[40].mxu1 }
 0x264   :  { %v811_v27 = vadd.f32 %v1563_v25, %v2126_v17  ;;  %v805_v28 = vpop.f32.mrb[41].mxu1 }
 0x265   :  { %v806_v29 = vadd.f32 %v2126_v17, %v805_v28  ;;  %1614 = vmatprep.mubr.msk.f32.mxu0 %vm522_vm1, %v866_v47 }
 0x266   :  { %1615 = vmatmul.mubr.msk.f32.gmra.mrb[38].mxu0 %vm522_vm1, %v867_v26  ;;  %v869_v32 = vmax.f32 %v811_v27, 0.0 }
 0x267   :  { %v868_v30 = vmax.f32 %v806_v29, 0.0  ;;  %v1566_v31 = vpop.f32.mrb[42].mxu1 }
 0x268   :  { %v821_v33 = vadd.f32 %v1566_v31, %v2126_v17  ;;  %v815_v34 = vpop.f32.mrb[43].mxu1 }
 0x269   :  { %v816_v35 = vadd.f32 %v2126_v17, %v815_v34  ;;  %1617 = vmatprep.mubr.msk.f32.mxu0 %vm522_vm1, %v868_v30 }
 0x26a   :  { %1618 = vmatmul.mubr.msk.f32.gmra.mrb[40].mxu0 %vm522_vm1, %v869_v32  ;;  %v871_v38 = vmax.f32 %v821_v33, 0.0 }
 0x26b   :  { %v870_v36 = vmax.f32 %v816_v35, 0.0  ;;  %v1569_v37 = vpop.f32.mrb[44].mxu1 }
 0x26c   :  { %v831_v39 = vadd.f32 %v1569_v37, %v2126_v17  ;;  %v825_v40 = vpop.f32.mrb[45].mxu1 }
 0x26d   :  { %v826_v41 = vadd.f32 %v2126_v17, %v825_v40  ;;  %1620 = vmatprep.mubr.msk.f32.mxu0 %vm522_vm1, %v870_v36 }
 0x26e   :  { %1621 = vmatmul.mubr.msk.f32.gmra.mrb[42].mxu0 %vm522_vm1, %v871_v38  ;;  %v873_v44 = vmax.f32 %v831_v39, 0.0 }
 0x26f   :  { %v872_v42 = vmax.f32 %v826_v41, 0.0  ;;  %v1572_v43 = vpop.f32.mrb[46].mxu1 }
 0x270   :  { %v841_v45 = vadd.f32 %v1572_v43, %v2126_v17  ;;  %v835_v46 = vpop.f32.mrb[47].mxu1 }
 0x271   :  { %v836_v48 = vadd.f32 %v2126_v17, %v835_v46  ;;  %1623 = vmatprep.mubr.msk.f32.mxu0 %vm522_vm1, %v872_v42 }
 0x272   :  { %1624 = vmatmul.mubr.msk.f32.gmra.mrb[44].mxu0 %vm522_vm1, %v873_v44  ;;  %v875_v50 = vmax.f32 %v841_v45, 0.0 }
 0x273   :  { %v874_v49 = vmax.f32 %v836_v48, 0.0 }
 0x275   :  { %1626 = vmatprep.mubr.msk.f32.mxu0 %vm522_vm1, %v874_v49 }
 0x276   :  { %1627 = vmatmul.mubr.msk.f32.gmra.mrb[46].mxu0 %vm522_vm1, %v875_v50 }
 0x30d   :  { %v1583_v53 = vpop.f32.mrb[16].mxu0 }
 0x30e   :  { %v1055_v54 = vadd.f32 %v1583_v53, %v2192_v52  ;;  %v1049_v55 = vpop.f32.mrb[17].mxu0 }
 0x30f   :  { %v1050_v56 = vadd.f32 %v2192_v52, %v1049_v55 }
 0x310   :  { %1209 = vst.msk [vmem:[#allocation14 + $0x8] sm:$0xff] %vm157_vm0, %v1055_v54 }
 0x311   :  { %1208 = vst.msk [vmem:[#allocation14] sm:$0xff] %vm157_vm0, %v1050_v56  ;;  %v1586_v17 = vpop.f32.mrb[18].mxu0 }
 0x312   :  { %v1065_v57 = vadd.f32 %v1586_v17, %v2192_v52  ;;  %v1059_v58 = vpop.f32.mrb[19].mxu0 }
 0x313   :  { %v1060_v51 = vadd.f32 %v2192_v52, %v1059_v58 }
 0x314   :  { %1211 = vst.msk [vmem:[#allocation14 + $0x18] sm:$0xff] %vm157_vm0, %v1065_v57 }
 0x315   :  { %1210 = vst.msk [vmem:[#allocation14 + $0x10] sm:$0xff] %vm157_vm0, %v1060_v51  ;;  %v1589_v60 = vpop.f32.mrb[20].mxu0 }
 0x316   :  { %v1075_v61 = vadd.f32 %v1589_v60, %v2192_v52  ;;  %v1069_v62 = vpop.f32.mrb[21].mxu0 }
 0x317   :  { %v1070_v63 = vadd.f32 %v2192_v52, %v1069_v62 }
 0x318   :  { %1213 = vst.msk [vmem:[#allocation14 + $0x28] sm:$0xff] %vm157_vm0, %v1075_v61 }
 0x319   :  { %1212 = vst.msk [vmem:[#allocation14 + $0x20] sm:$0xff] %vm157_vm0, %v1070_v63  ;;  %v1592_v0 = vpop.f32.mrb[22].mxu0 }
 0x31a   :  { %v1085_v59 = vadd.f32 %v1592_v0, %v2192_v52  ;;  %v1079_v1 = vpop.f32.mrb[23].mxu0 }
 0x31b   :  { %v1080_v2 = vadd.f32 %v2192_v52, %v1079_v1 }
 0x31c   :  { %1215 = vst.msk [vmem:[#allocation14 + $0x38] sm:$0xff] %vm157_vm0, %v1085_v59 }
 0x31d   :  { %1214 = vst.msk [vmem:[#allocation14 + $0x30] sm:$0xff] %vm157_vm0, %v1080_v2  ;;  %v1595_v4 = vpop.f32.mrb[24].mxu0 }
 0x31e   :  { %v1095_v3 = vadd.f32 %v1595_v4, %v2192_v52  ;;  %v1089_v5 = vpop.f32.mrb[25].mxu0 }
 0x31f   :  { %v1090_v6 = vadd.f32 %v2192_v52, %v1089_v5 }
 0x320   :  { %1217 = vst.msk [vmem:[#allocation14 + $0x48] sm:$0xff] %vm157_vm0, %v1095_v3 }
 0x321   :  { %1216 = vst.msk [vmem:[#allocation14 + $0x40] sm:$0xff] %vm157_vm0, %v1090_v6  ;;  %v1598_v7 = vpop.f32.mrb[26].mxu0 }
 0x322   :  { %v1105_v8 = vadd.f32 %v1598_v7, %v2192_v52  ;;  %v1099_v9 = vpop.f32.mrb[27].mxu0 }
 0x323   :  { %v1100_v10 = vadd.f32 %v2192_v52, %v1099_v9 }
 0x324   :  { %1219 = vst.msk [vmem:[#allocation14 + $0x58] sm:$0xff] %vm157_vm0, %v1105_v8 }
 0x325   :  { %1218 = vst.msk [vmem:[#allocation14 + $0x50] sm:$0xff] %vm157_vm0, %v1100_v10  ;;  %v1601_v11 = vpop.f32.mrb[28].mxu0 }
 0x326   :  { %v1115_v12 = vadd.f32 %v1601_v11, %v2192_v52  ;;  %v1109_v13 = vpop.f32.mrb[29].mxu0 }
 0x327   :  { %v1110_v14 = vadd.f32 %v2192_v52, %v1109_v13 }
 0x328   :  { %1221 = vst.msk [vmem:[#allocation14 + $0x68] sm:$0xff] %vm157_vm0, %v1115_v12 }
 0x329   :  { %1220 = vst.msk [vmem:[#allocation14 + $0x60] sm:$0xff] %vm157_vm0, %v1110_v14  ;;  %v1604_v15 = vpop.f32.mrb[30].mxu0 }
 0x32a   :  { %v1125_v16 = vadd.f32 %v1604_v15, %v2192_v52  ;;  %v1119_v18 = vpop.f32.mrb[31].mxu0 }
 0x32b   :  { %v1120_v19 = vadd.f32 %v2192_v52, %v1119_v18 }
 0x32c   :  { %1223 = vst.msk [vmem:[#allocation14 + $0x78] sm:$0xff] %vm157_vm0, %v1125_v16 }
 0x32d   :  { %1222 = vst.msk [vmem:[#allocation14 + $0x70] sm:$0xff] %vm157_vm0, %v1120_v19  ;;  %v1607_v20 = vpop.f32.mrb[32].mxu0 }
 0x32e   :  { %v1135_v21 = vadd.f32 %v1607_v20, %v2192_v52  ;;  %v1129_v22 = vpop.f32.mrb[33].mxu0 }
 0x32f   :  { %v1130_v23 = vadd.f32 %v2192_v52, %v1129_v22 }
 0x330   :  { %1225 = vst.msk [vmem:[#allocation14 + $0x88] sm:$0xff] %vm157_vm0, %v1135_v21 }
 0x331   :  { %1224 = vst.msk [vmem:[#allocation14 + $0x80] sm:$0xff] %vm157_vm0, %v1130_v23  ;;  %v1610_v24 = vpop.f32.mrb[34].mxu0 }
 0x332   :  { %v1145_v47 = vadd.f32 %v1610_v24, %v2192_v52  ;;  %v1139_v25 = vpop.f32.mrb[35].mxu0 }
 0x333   :  { %v1140_v26 = vadd.f32 %v2192_v52, %v1139_v25 }
 0x334   :  { %1227 = vst.msk [vmem:[#allocation14 + $0x98] sm:$0xff] %vm157_vm0, %v1145_v47 }
 0x335   :  { %1226 = vst.msk [vmem:[#allocation14 + $0x90] sm:$0xff] %vm157_vm0, %v1140_v26  ;;  %v1613_v27 = vpop.f32.mrb[36].mxu0 }
 0x336   :  { %v1155_v28 = vadd.f32 %v1613_v27, %v2192_v52  ;;  %v1149_v29 = vpop.f32.mrb[37].mxu0 }
 0x337   :  { %v1150_v30 = vadd.f32 %v2192_v52, %v1149_v29 }
 0x338   :  { %1229 = vst.msk [vmem:[#allocation14 + $0xa8] sm:$0xff] %vm157_vm0, %v1155_v28 }
 0x339   :  { %1228 = vst.msk [vmem:[#allocation14 + $0xa0] sm:$0xff] %vm157_vm0, %v1150_v30  ;;  %v1616_v31 = vpop.f32.mrb[38].mxu0 }
 0x33a   :  { %v1165_v32 = vadd.f32 %v1616_v31, %v2192_v52  ;;  %v1159_v33 = vpop.f32.mrb[39].mxu0 }
 0x33b   :  { %v1160_v34 = vadd.f32 %v2192_v52, %v1159_v33 }
 0x33c   :  { %1231 = vst.msk [vmem:[#allocation14 + $0xb8] sm:$0xff] %vm157_vm0, %v1165_v32 }
 0x33d   :  { %1230 = vst.msk [vmem:[#allocation14 + $0xb0] sm:$0xff] %vm157_vm0, %v1160_v34  ;;  %v1619_v35 = vpop.f32.mrb[40].mxu0 }
 0x33e   :  { %v1175_v36 = vadd.f32 %v1619_v35, %v2192_v52  ;;  %v1169_v37 = vpop.f32.mrb[41].mxu0 }
 0x33f   :  { %v1170_v38 = vadd.f32 %v2192_v52, %v1169_v37 }
 0x340   :  { %1233 = vst.msk [vmem:[#allocation14 + $0xc8] sm:$0xff] %vm157_vm0, %v1175_v36 }
 0x341   :  { %1232 = vst.msk [vmem:[#allocation14 + $0xc0] sm:$0xff] %vm157_vm0, %v1170_v38  ;;  %v1622_v39 = vpop.f32.mrb[42].mxu0 }
 0x342   :  { %v1185_v40 = vadd.f32 %v1622_v39, %v2192_v52  ;;  %v1179_v41 = vpop.f32.mrb[43].mxu0 }
 0x343   :  { %v1180_v42 = vadd.f32 %v2192_v52, %v1179_v41 }
 0x344   :  { %1235 = vst.msk [vmem:[#allocation14 + $0xd8] sm:$0xff] %vm157_vm0, %v1185_v40 }
 0x345   :  { %1234 = vst.msk [vmem:[#allocation14 + $0xd0] sm:$0xff] %vm157_vm0, %v1180_v42  ;;  %v1625_v43 = vpop.f32.mrb[44].mxu0 }
 0x346   :  { %v1195_v44 = vadd.f32 %v1625_v43, %v2192_v52  ;;  %v1189_v45 = vpop.f32.mrb[45].mxu0 }
 0x347   :  { %v1190_v46 = vadd.f32 %v2192_v52, %v1189_v45 }
 0x348   :  { %1237 = vst.msk [vmem:[#allocation14 + $0xe8] sm:$0xff] %vm157_vm0, %v1195_v44 }
 0x349   :  { %1236 = vst.msk [vmem:[#allocation14 + $0xe0] sm:$0xff] %vm157_vm0, %v1190_v46  ;;  %v1628_v48 = vpop.f32.mrb[46].mxu0 }
 0x34a   :  { %v1205_v49 = vadd.f32 %v1628_v48, %v2192_v52  ;;  %v1199_v50 = vpop.f32.mrb[47].mxu0 }
 0x34b   :  { %v1200_v53 = vadd.f32 %v2192_v52, %v1199_v50 }
 0x34c   :  { %1239 = vst.msk [vmem:[#allocation14 + $0xf8] sm:$0xff] %vm157_vm0, %v1205_v49 }
 0x34d   :  { %1238 = vst.msk [vmem:[#allocation14 + $0xf0] sm:$0xff] %vm157_vm0, %v1200_v53 }
 0x34e   :  { %1826 = shalt.err (!%p1823_p4)
}
 0x34f   :  { %s1827_s19 = scalar_lea.hbm %s2280_s7, 4096 }
 0x350   :  { %p1828_p5 = scmp.ne.s32.totalorder %s2280_s7, %s1827_s19  ;;  %p1831_p6 = scmp.lt.u32.totalorder %s1827_s19, %s2280_s7 }
 0x352   :  { %p1833_p7 = pnand %p1831_p6, %p1828_p5 }
 0x354   :  { %1836 = shalt.err (!%p1833_p7)
}
 0x355   :  { %1251 = dma.vmem_to_hbm [thread:$0]  %s1246_s30, 4096, %s2280_s7, [#allocation4], %s1849_s13, %s1849_s13, %s1850_s14  }
 0x356   :  { %1845 = dma.done.wait [#allocation4], 4096  }
 0x357   :  { %1846 = vsyncadd [#allocation4], 4294963200 }
 0x358   :  { %1255 = vsyncpa [#allocation3], 1 }
 0x359   :  { %1256 = vsyncpa [#allocation6], 1 }
 0x35a   :  { %1257 = vsyncpa [#allocation9], 1 }
 0x35b   :  { %1258 = vsyncpa [#allocation12], 1 }
 0x35c   :  { %1259 = vsyncpa [#allocation4], 1 }

// kernel: tpu_custom_call.1
= control target key start
LH: loop header
LB: loop body
LE: loop exit
PB: predicated region body
PF: predicated region fallthrough
CT: control target
= control target key end

     0   :  { %12 = vsyncpa [#allocation3], 0  ;;  %s2273_s0 = inlined_call_operand.hbm [shape: f32[256,16], index: 0, kind: input, shape index: {}]   ;;  %s2274_s1 = inlined_call_operand.hbm [shape: f32[16,32], index: 1, kind: input, shape index: {}]   ;;  %s2275_s2 = inlined_call_operand.hbm [shape: f32[1,32], index: 2, kind: input, shape index: {}]   ;;  %s2276_s3 = inlined_call_operand.hbm [shape: f32[32,32], index: 3, kind: input, shape index: {}]   ;;  %s2277_s4 = inlined_call_operand.hbm [shape: f32[1,32], index: 4, kind: input, shape index: {}]   ;;  %s2278_s5 = inlined_call_operand.hbm [shape: f32[32,16], index: 5, kind: input, shape index: {}]   ;;  %s2279_s6 = inlined_call_operand.hbm [shape: f32[1,16], index: 6, kind: input, shape index: {}]   ;;  %s2280_s7 = inlined_call_operand.hbm [shape: f32[256,16], index: 7, kind: output, shape index: {}]  }
   0x1   :  { %13 = vsyncpa [#allocation6], 0 }
   0x2   :  { %14 = vsyncpa [#allocation9], 0 }
   0x3   :  { %15 = vsyncpa [#allocation12], 0 }
   0x4   :  { %16 = vsyncpa [#allocation4], 0  ;;  %s1847_s24 = smov [#allocation5]   ;;  %s1848_s26 = smov [#allocation8]  }
   0x5   :  { %s34_s25 = sshll.u32 %s1847_s24, 4  ;;  %s56_s27 = sshll.u32 %s1848_s26, 4  ;;  %s35_s25 = int_to_ptr.vmem [resolvable:$true] %s34_s25  ;;  %s1897_s27 = int_to_ptr.vmem [resolvable:$true] %s56_s27 }
   0x6   :  { %s1661_s30 = scalar_lea.hbm %s2274_s1, 256 }
   0x7   :  { %p1662_p0 = scmp.ne.s32.totalorder %s2274_s1, %s1661_s30  ;;  %p1665_p1 = scmp.lt.u32.totalorder %s1661_s30, %s2274_s1 }
   0x9   :  { %p1667_p2 = pnand %p1665_p1, %p1662_p0 }
   0xb   :  { %1670 = shalt.err (!%p1667_p2)
}
   0xc   :  { %s1671_s12 = scalar_lea.vmem %s35_s25, 256  ;;  %p1676_p4 = scmp.lt.s32.totalorder %s35_s25, %s35_s25 }
   0xd   :  { %p1672_p3 = scmp.ne.s32.totalorder %s35_s25, %s1671_s12  ;;  %p1677_p5 = scmp.lt.s32.totalorder %s1671_s12, %s1671_s12 }
   0xf   :  { %p1678_p6 = por %p1677_p5, %p1676_p4 }
  0x11   :  { %p1679_p7 = pnand %p1678_p6, %p1672_p3 }
  0x13   :  { %1682 = shalt.err (!%p1679_p7)
}
  0x14   :  { %s1849_s13 = smov 128   ;;  %s1850_s14 = smov 8  }
  0x15   :  { %40 = dma.hbm_to_vmem [thread:$0]  %s2274_s1, 256, %s35_s25, [#allocation6], %s1849_s13, %s1849_s13, %s1850_s14  }
  0x16   :  { %s1683_s19 = scalar_lea.hbm %s2276_s3, 512 }
  0x17   :  { %p1684_p8 = scmp.ne.s32.totalorder %s2276_s3, %s1683_s19  ;;  %p1687_p9 = scmp.lt.u32.totalorder %s1683_s19, %s2276_s3 }
  0x19   :  { %p1689_p10 = pnand %p1687_p9, %p1684_p8 }
  0x1b   :  { %1692 = shalt.err (!%p1689_p10)
}
  0x1c   :  { %s1693_s24 = scalar_lea.vmem %s1897_s27, 512  ;;  %p1698_p12 = scmp.lt.s32.totalorder %s1897_s27, %s1897_s27 }
  0x1d   :  { %p1694_p11 = scmp.ne.s32.totalorder %s1897_s27, %s1693_s24  ;;  %p1699_p13 = scmp.lt.s32.totalorder %s1693_s24, %s1693_s24 }
  0x1f   :  { %p1700_p0 = por %p1699_p13, %p1698_p12 }
  0x21   :  { %p1701_p1 = pnand %p1700_p0, %p1694_p11 }
  0x23   :  { %1704 = shalt.err (!%p1701_p1)
}
  0x24   :  { %62 = dma.hbm_to_vmem [thread:$0]  %s2276_s3, 512, %s1897_s27, [#allocation9], %s1849_s13, %s1849_s13, %s1850_s14  }
  0x25   :  { %s1851_s26 = smov [#allocation11]   ;;  %s1852_s29 = smov [#allocation2]  }
  0x26   :  { %s78_s28 = sshll.u32 %s1851_s26, 4  ;;  %s22_s30 = sshll.u32 %s1852_s29, 4  ;;  %s79_s28 = int_to_ptr.vmem [resolvable:$true] %s78_s28  ;;  %s1934_s30 = int_to_ptr.vmem [resolvable:$true] %s22_s30 }
  0x27   :  { %s1705_s10 = scalar_lea.hbm %s2278_s5, 512 }
  0x28   :  { %p1706_p2 = scmp.ne.s32.totalorder %s2278_s5, %s1705_s10  ;;  %p1709_p3 = scmp.lt.u32.totalorder %s1705_s10, %s2278_s5 }
  0x2a   :  { %p1711_p4 = pnand %p1709_p3, %p1706_p2 }
  0x2c   :  { %1714 = shalt.err (!%p1711_p4)
}
  0x2d   :  { %s1715_s3 = scalar_lea.vmem %s79_s28, 512  ;;  %p1720_p6 = scmp.lt.s32.totalorder %s79_s28, %s79_s28 }
  0x2e   :  { %p1716_p5 = scmp.ne.s32.totalorder %s79_s28, %s1715_s3  ;;  %p1721_p7 = scmp.lt.s32.totalorder %s1715_s3, %s1715_s3 }
  0x30   :  { %p1722_p8 = por %p1721_p7, %p1720_p6 }
  0x32   :  { %p1723_p9 = pnand %p1722_p8, %p1716_p5 }
  0x34   :  { %1726 = shalt.err (!%p1723_p9)
}
  0x35   :  { %84 = dma.hbm_to_vmem [thread:$0]  %s2278_s5, 512, %s79_s28, [#allocation12], %s1849_s13, %s1849_s13, %s1850_s14  }
  0x36   :  { %s1727_s20 = scalar_lea.hbm %s2273_s0, 4096 }
  0x37   :  { %p1728_p10 = scmp.ne.s32.totalorder %s2273_s0, %s1727_s20  ;;  %p1731_p11 = scmp.lt.u32.totalorder %s1727_s20, %s2273_s0 }
  0x39   :  { %p1733_p12 = pnand %p1731_p11, %p1728_p10 }
  0x3b   :  { %1736 = shalt.err (!%p1733_p12)
}
  0x3c   :  { %s1737_s1 = scalar_lea.vmem %s1934_s30, 4096  ;;  %p1742_p0 = scmp.lt.s32.totalorder %s1934_s30, %s1934_s30 }
  0x3d   :  { %p1738_p13 = scmp.ne.s32.totalorder %s1934_s30, %s1737_s1  ;;  %p1743_p1 = scmp.lt.s32.totalorder %s1737_s1, %s1737_s1 }
  0x3f   :  { %p1744_p2 = por %p1743_p1, %p1742_p0 }
  0x41   :  { %p1745_p3 = pnand %p1744_p2, %p1738_p13 }
  0x43   :  { %1748 = shalt.err (!%p1745_p3)
}
  0x44   :  { %28 = dma.hbm_to_vmem [thread:$0]  %s2273_s0, 4096, %s1934_s30, [#allocation3], %s1849_s13, %s1849_s13, %s1850_s14  }
  0x45   :  { %s1853_s26 = smov [#allocation7]   ;;  %s1854_s29 = smov [#allocation10]  }
  0x46   :  { %s47_s28 = sshll.u32 %s1853_s26, 4  ;;  %s69_s8 = sshll.u32 %s1854_s29, 4  ;;  %s48_s28 = int_to_ptr.vmem [resolvable:$true] %s47_s28  ;;  %s70_s8 = int_to_ptr.vmem [resolvable:$true] %s69_s8 }
  0x47   :  { %s1749_s11 = scalar_lea.hbm %s2275_s2, 16 }
  0x48   :  { %p1750_p4 = scmp.ne.s32.totalorder %s2275_s2, %s1749_s11  ;;  %p1753_p5 = scmp.lt.u32.totalorder %s1749_s11, %s2275_s2 }
  0x4a   :  { %p1755_p6 = pnand %p1753_p5, %p1750_p4 }
  0x4c   :  { %1758 = shalt.err (!%p1755_p6)
}
  0x4d   :  { %s1759_s0 = scalar_lea.vmem %s48_s28, 16  ;;  %s1763_s30 = scalar_lea.vmem %s48_s28, 32 }
  0x4e   :  { %p1760_p7 = scmp.ne.s32.totalorder %s48_s28, %s1759_s0  ;;  %p1764_p8 = scmp.lt.s32.totalorder %s48_s28, %s48_s28 }
  0x4f   :  { %p1765_p9 = scmp.lt.s32.totalorder %s1763_s30, %s1759_s0 }
  0x51   :  { %p1766_p10 = por %p1765_p9, %p1764_p8 }
  0x53   :  { %p1767_p11 = pnand %p1766_p10, %p1760_p7 }
  0x55   :  { %1770 = shalt.err (!%p1767_p11)
}
  0x56   :  { %50 = dma.hbm_to_vmem [thread:$0]  %s2275_s2, 16, %s48_s28, [#allocation6]  }
  0x57   :  { %s1771_s20 = scalar_lea.hbm %s2277_s4, 16 }
  0x58   :  { %p1772_p12 = scmp.ne.s32.totalorder %s2277_s4, %s1771_s20  ;;  %p1775_p13 = scmp.lt.u32.totalorder %s1771_s20, %s2277_s4 }
  0x5a   :  { %p1777_p0 = pnand %p1775_p13, %p1772_p12 }
  0x5c   :  { %1780 = shalt.err (!%p1777_p0)
}
  0x5d   :  { %s1781_s1 = scalar_lea.vmem %s70_s8, 16  ;;  %s1785_s5 = scalar_lea.vmem %s70_s8, 32 }
  0x5e   :  { %p1782_p1 = scmp.ne.s32.totalorder %s70_s8, %s1781_s1  ;;  %p1786_p2 = scmp.lt.s32.totalorder %s70_s8, %s70_s8 }
  0x5f   :  { %p1787_p3 = scmp.lt.s32.totalorder %s1785_s5, %s1781_s1 }
  0x61   :  { %p1788_p4 = por %p1787_p3, %p1786_p2 }
  0x63   :  { %p1789_p5 = pnand %p1788_p4, %p1782_p1 }
  0x65   :  { %1792 = shalt.err (!%p1789_p5)
}
  0x66   :  { %72 = dma.hbm_to_vmem [thread:$0]  %s2277_s4, 16, %s70_s8, [#allocation9]  }
  0x67   :  { %s1855_s26 = smov [#allocation13]   ;;  %s1793_s10 = scalar_lea.hbm %s2279_s6, 16 }
  0x68   :  { %s91_s28 = sshll.u32 %s1855_s26, 4  ;;  %p1794_p6 = scmp.ne.s32.totalorder %s2279_s6, %s1793_s10  ;;  %s92_s28 = int_to_ptr.vmem [resolvable:$true] %s91_s28 }
  0x69   :  { %p1797_p7 = scmp.lt.u32.totalorder %s1793_s10, %s2279_s6 }
  0x6b   :  { %p1799_p8 = pnand %p1797_p7, %p1794_p6 }
  0x6d   :  { %1802 = shalt.err (!%p1799_p8)
}
  0x6e   :  { %s1803_s3 = scalar_lea.vmem %s92_s28, 16  ;;  %s1807_s4 = scalar_lea.vmem %s92_s28, 32 }
  0x6f   :  { %p1804_p9 = scmp.ne.s32.totalorder %s92_s28, %s1803_s3  ;;  %p1808_p10 = scmp.lt.s32.totalorder %s92_s28, %s92_s28 }
  0x70   :  { %p1809_p11 = scmp.lt.s32.totalorder %s1807_s4, %s1803_s3 }
  0x72   :  { %p1810_p12 = por %p1809_p11, %p1808_p10 }
  0x74   :  { %p1811_p13 = pnand %p1810_p12, %p1804_p9 }
  0x76   :  { %1814 = shalt.err (!%p1811_p13)
}
  0x77   :  { %94 = dma.hbm_to_vmem [thread:$0]  %s2279_s6, 16, %s92_s28, [#allocation12]  }
  0x78   :  { %1837 = dma.done.wait [#allocation3], 4096  }
  0x79   :  { %1838 = vsyncadd [#allocation3], 4294963200 }
  0x7a   :  { %1839 = dma.done.wait [#allocation6], 272  }
  0x7b   :  { %1840 = vsyncadd [#allocation6], 4294967024 }
  0x7c   :  { %1841 = dma.done.wait [#allocation9], 528  }
  0x7d   :  { %1842 = vsyncadd [#allocation9], 4294966768 }
  0x7e   :  { %1843 = dma.done.wait [#allocation12], 528  }
  0x7f   :  { %1844 = vsyncadd [#allocation12], 4294966768  ;;  %vm157_vm0 = vcmask 130048   ;;  %v148_v0 = vld [vmem:[#allocation5] sm:$0xff]  ;;  %v149_v1 = vld [vmem:[#allocation5 + $0x8] sm:$0xff]  ;;  %vm522_vm1 = vcmask 261120  }
  0x80   :  { %v116_v2 = vld [vmem:[#allocation2] sm:$0xff]  ;;  %v1629_v3 = vpack.c.bf16 %v149_v1, %v148_v0  ;;  %v117_v4 = vld [vmem:[#allocation2 + $0x8] sm:$0xff]  ;;  %v118_v5 = vld [vmem:[#allocation2 + $0x10] sm:$0xff]  ;;  %s1856_s6 = smov [#allocation14]  }
  0x81   :  { %1469 = vmatprep.mubr.msk.f32.mxu0 %vm157_vm0, %v116_v2  ;;  %v132_v6 = vld [vmem:[#allocation2 + $0x80] sm:$0xff]  ;;  %v133_v7 = vld [vmem:[#allocation2 + $0x88] sm:$0xff]  ;;  %v134_v8 = vld [vmem:[#allocation2 + $0x90] sm:$0xff]  ;;  %s1245_s30 = sshll.u32 %s1856_s6, 4  ;;  %s1246_s30 = int_to_ptr.vmem [resolvable:$true] %s1245_s30 }
  0x82   :  { %1630 = vmatprep.subr.bf16.mxu0 %v1629_v3  ;;  %1649 = vmatprep.subr.bf16.mxu1 %v1629_v3  ;;  %v119_v9 = vld [vmem:[#allocation2 + $0x18] sm:$0xff]  ;;  %v120_v10 = vld [vmem:[#allocation2 + $0x20] sm:$0xff]  ;;  %v121_v15 = vld [vmem:[#allocation2 + $0x28] sm:$0xff]  ;;  %s1815_s27 = scalar_lea.vmem %s1246_s30, 4096  ;;  %p1820_p1 = scmp.lt.s32.totalorder %s1246_s30, %s1246_s30 }
  0x83   :  { %1632 = vmatpush3.bf16.msra.mxu0 %v1629_v3  ;;  %1650 = vmatpush3.bf16.msra.mxu1 %v1629_v3  ;;  %v135_v11 = vld [vmem:[#allocation2 + $0x98] sm:$0xff]  ;;  %v136_v12 = vld [vmem:[#allocation2 + $0xa0] sm:$0xff]  ;;  %v514_v18 = vld [vmem:[#allocation8 + $0x18] sm:$0xff]  ;;  %p1816_p0 = scmp.ne.s32.totalorder %s1246_s30, %s1815_s27  ;;  %p1821_p2 = scmp.lt.s32.totalorder %s1815_s27, %s1815_s27 }
  0x84   :  { %1493 = vmatprep.mubr.msk.f32.mxu1 %vm157_vm0, %v132_v6  ;;  %v511_v13 = vld [vmem:[#allocation8] sm:$0xff]  ;;  %v512_v14 = vld [vmem:[#allocation8 + $0x8] sm:$0xff]  ;;  %v513_v17 = vld [vmem:[#allocation8 + $0x10] sm:$0xff] }
  0x85   :  { %v1633_v16 = vpack.c.bf16 %v512_v14, %v511_v13  ;;  %v122_v19 = vld [vmem:[#allocation2 + $0x30] sm:$0xff]  ;;  %v137_v20 = vld [vmem:[#allocation2 + $0xa8] sm:$0xff]  ;;  %v1637_v21 = vpack.c.bf16 %v514_v18, %v513_v17  ;;  %v123_v23 = vld [vmem:[#allocation2 + $0x38] sm:$0xff]  ;;  %p1822_p3 = por %p1821_p2, %p1820_p1 }
  0x86   :  { %1470 = vmatmul.mubr.msk.f32.vlgmr.msra.gmra.mrb[0].mxu0 %vm157_vm0, %v117_v4  ;;  %1494 = vmatmul.mubr.msk.f32.vlgmr.msra.gmra.mrb[0].mxu1 %vm157_vm0, %v133_v7  ;;  %v138_v22 = vld [vmem:[#allocation2 + $0xb0] sm:$0xff]  ;;  %v124_v24 = vld [vmem:[#allocation2 + $0x40] sm:$0xff]  ;;  %v139_v25 = vld [vmem:[#allocation2 + $0xb8] sm:$0xff] }
  0x87   :  { %1472 = vmatprep.mubr.msk.f32.mxu0 %vm157_vm0, %v118_v5  ;;  %1496 = vmatprep.mubr.msk.f32.mxu1 %vm157_vm0, %v134_v8  ;;  %v140_v26 = vld [vmem:[#allocation2 + $0xc0] sm:$0xff]  ;;  %v125_v27 = vld [vmem:[#allocation2 + $0x48] sm:$0xff]  ;;  %v126_v28 = vld [vmem:[#allocation2 + $0x50] sm:$0xff]  ;;  %p1823_p4 = pnand %p1822_p3, %p1816_p0 }
  0x88   :  { %1634 = vmatprep.subr.bf16.mxu1 %v1633_v16  ;;  %v141_v29 = vld [vmem:[#allocation2 + $0xc8] sm:$0xff]  ;;  %v142_v30 = vld [vmem:[#allocation2 + $0xd0] sm:$0xff]  ;;  %v127_v31 = vld [vmem:[#allocation2 + $0x58] sm:$0xff] }
  0x89   :  { %1636 = vmatpush3.bf16.msra.mxu1 %v1633_v16  ;;  %v128_v32 = vld [vmem:[#allocation2 + $0x60] sm:$0xff]  ;;  %v143_v33 = vld [vmem:[#allocation2 + $0xd8] sm:$0xff]  ;;  %v129_v35 = vld [vmem:[#allocation2 + $0x68] sm:$0xff] }
  0x8a   :  { %1473 = vmatmul.mubr.msk.f32.gmra.mrb[2].mxu0 %vm157_vm0, %v119_v9  ;;  %1497 = vmatmul.mubr.msk.f32.gmra.mrb[2].mxu1 %vm157_vm0, %v135_v11  ;;  %v144_v34 = vld [vmem:[#allocation2 + $0xe0] sm:$0xff]  ;;  %v130_v36 = vld [vmem:[#allocation2 + $0x70] sm:$0xff]  ;;  %v145_v37 = vld [vmem:[#allocation2 + $0xe8] sm:$0xff] }
  0x8b   :  { %1475 = vmatprep.mubr.msk.f32.mxu0 %vm157_vm0, %v120_v10  ;;  %1499 = vmatprep.mubr.msk.f32.mxu1 %vm157_vm0, %v136_v12  ;;  %v146_v38 = vld [vmem:[#allocation2 + $0xf0] sm:$0xff]  ;;  %v131_v39 = vld [vmem:[#allocation2 + $0x78] sm:$0xff]  ;;  %v878_v43 = vld [vmem:[#allocation11 + $0x10] sm:$0xff] }
  0x8c   :  { %1638 = vmatprep.subr.bf16.mxu1 %v1637_v21  ;;  %v147_v40 = vld [vmem:[#allocation2 + $0xf8] sm:$0xff]  ;;  %v879_v45 = vld [vmem:[#allocation11 + $0x18] sm:$0xff] }
  0x8d   :  { %1640 = vmatpush3.bf16.msra.mxu1 %v1637_v21  ;;  %v876_v41 = vld [vmem:[#allocation11] sm:$0xff]  ;;  %v877_v42 = vld [vmem:[#allocation11 + $0x8] sm:$0xff]  ;;  %v1645_v46 = vpack.c.bf16 %v879_v45, %v878_v43  ;;  %v2039_v47 = vld [vmem:[#allocation7] ss:$0 sm:$0xff] }
  0x8e   :  { %1476 = vmatmul.mubr.msk.f32.gmra.mrb[4].mxu0 %vm157_vm0, %v121_v15  ;;  %1500 = vmatmul.mubr.msk.f32.gmra.mrb[4].mxu1 %vm157_vm0, %v137_v20  ;;  %v1641_v44 = vpack.c.bf16 %v877_v42, %v876_v41 }
  0x8f   :  { %1478 = vmatprep.mubr.msk.f32.mxu0 %vm157_vm0, %v122_v19  ;;  %1502 = vmatprep.mubr.msk.f32.mxu1 %vm157_vm0, %v138_v22 }
  0x90   :  { %1642 = vmatprep.subr.bf16.mxu0 %v1641_v44 }
  0x91   :  { %1644 = vmatpush3.bf16.msra.mxu0 %v1641_v44 }
  0x92   :  { %1479 = vmatmul.mubr.msk.f32.gmra.mrb[6].mxu0 %vm157_vm0, %v123_v23  ;;  %1503 = vmatmul.mubr.msk.f32.gmra.mrb[6].mxu1 %vm157_vm0, %v139_v25 }
  0x93   :  { %1481 = vmatprep.mubr.msk.f32.mxu0 %vm157_vm0, %v124_v24  ;;  %1505 = vmatprep.mubr.msk.f32.mxu1 %vm157_vm0, %v140_v26 }
  0x94   :  { %1646 = vmatprep.subr.bf16.mxu0 %v1645_v46 }
  0x95   :  { %1648 = vmatpush3.bf16.msra.mxu0 %v1645_v46 }
  0x96   :  { %1482 = vmatmul.mubr.msk.f32.gmra.mrb[8].mxu0 %vm157_vm0, %v125_v27  ;;  %1506 = vmatmul.mubr.msk.f32.gmra.mrb[8].mxu1 %vm157_vm0, %v141_v29 }
  0x97   :  { %1484 = vmatprep.mubr.msk.f32.mxu0 %vm157_vm0, %v126_v28  ;;  %1508 = vmatprep.mubr.msk.f32.mxu1 %vm157_vm0, %v142_v30 }
  0x9a   :  { %1485 = vmatmul.mubr.msk.f32.gmra.mrb[10].mxu0 %vm157_vm0, %v127_v31  ;;  %1509 = vmatmul.mubr.msk.f32.gmra.mrb[10].mxu1 %vm157_vm0, %v143_v33 }
  0x9b   :  { %1487 = vmatprep.mubr.msk.f32.mxu0 %vm157_vm0, %v128_v32  ;;  %1511 = vmatprep.mubr.msk.f32.mxu1 %vm157_vm0, %v144_v34 }
  0x9e   :  { %1488 = vmatmul.mubr.msk.f32.gmra.mrb[12].mxu0 %vm157_vm0, %v129_v35  ;;  %1512 = vmatmul.mubr.msk.f32.gmra.mrb[12].mxu1 %vm157_vm0, %v145_v37 }
  0x9f   :  { %1490 = vmatprep.mubr.msk.f32.mxu0 %vm157_vm0, %v130_v36  ;;  %1514 = vmatprep.mubr.msk.f32.mxu1 %vm157_vm0, %v146_v38 }
  0xa2   :  { %1491 = vmatmul.mubr.msk.f32.gmra.mrb[14].mxu0 %vm157_vm0, %v131_v39  ;;  %1515 = vmatmul.mubr.msk.f32.gmra.mrb[14].mxu1 %vm157_vm0, %v147_v40 }
 0x159   :  { %v1471_v48 = vpop.f32.mrb[0].mxu0  ;;  %v2042_v51 = vpop.f32.mrb[0].mxu1 }
 0x15a   :  { %v326_v49 = vadd.f32 %v1471_v48, %v2039_v47  ;;  %v320_v50 = vpop.f32.mrb[1].mxu0  ;;  %v2045_v53 = vpop.f32.mrb[1].mxu1 }
 0x15b   :  { %v321_v52 = vadd.f32 %v2039_v47, %v320_v50  ;;  %v401_v40 = vadd.f32 %v2039_v47, %v2045_v53  ;;  %v406_v53 = vadd.f32 %v2042_v51, %v2039_v47 }
 0x15c   :  { %v480_v56 = vmax.f32 %v326_v49, 0.0 }
 0x15d   :  { %v479_v54 = vmax.f32 %v321_v52, 0.0  ;;  %v1474_v55 = vpop.f32.mrb[2].mxu0  ;;  %v2048_v59 = vpop.f32.mrb[2].mxu1  ;;  %v495_v49 = vmax.f32 %v401_v40, 0.0 }
 0x15e   :  { %v336_v57 = vadd.f32 %v1474_v55, %v2039_v47  ;;  %v330_v58 = vpop.f32.mrb[3].mxu0  ;;  %v2052_v61 = vpop.f32.mrb[3].mxu1 }
 0x15f   :  { %v331_v60 = vadd.f32 %v2039_v47, %v330_v58  ;;  %1525 = vmatprep.mubr.msk.f32.mxu1 %vm522_vm1, %v479_v54  ;;  %v411_v50 = vadd.f32 %v2039_v47, %v2052_v61 }
 0x160   :  { %1526 = vmatmul.mubr.msk.f32.vlgmr.msra.gmra.mrb[16].mxu1 %vm522_vm1, %v480_v56  ;;  %v482_v0 = vmax.f32 %v336_v57, 0.0  ;;  %v496_v56 = vmax.f32 %v406_v53, 0.0  ;;  %v416_v57 = vadd.f32 %v2048_v59, %v2039_v47 }
 0x161   :  { %v481_v62 = vmax.f32 %v331_v60, 0.0  ;;  %v1477_v63 = vpop.f32.mrb[4].mxu0  ;;  %v2056_v3 = vpop.f32.mrb[4].mxu1  ;;  %v497_v54 = vmax.f32 %v411_v50, 0.0 }
 0x162   :  { %v346_v1 = vadd.f32 %v1477_v63, %v2039_v47  ;;  %v340_v2 = vpop.f32.mrb[5].mxu0  ;;  %v420_v5 = vpop.f32.mrb[5].mxu1  ;;  %v498_v60 = vmax.f32 %v416_v57, 0.0  ;;  %v426_v61 = vadd.f32 %v2056_v3, %v2039_v47 }
 0x163   :  { %v341_v4 = vadd.f32 %v2039_v47, %v340_v2  ;;  %1528 = vmatprep.mubr.msk.f32.mxu1 %vm522_vm1, %v481_v62  ;;  %v421_v55 = vadd.f32 %v2039_v47, %v420_v5 }
 0x164   :  { %1529 = vmatmul.mubr.msk.f32.gmra.mrb[18].mxu1 %vm522_vm1, %v482_v0  ;;  %v484_v8 = vmax.f32 %v346_v1, 0.0  ;;  %v500_v0 = vmax.f32 %v426_v61, 0.0 }
 0x165   :  { %v483_v6 = vmax.f32 %v341_v4, 0.0  ;;  %v1480_v7 = vpop.f32.mrb[6].mxu0  ;;  %v2062_v11 = vpop.f32.mrb[6].mxu1  ;;  %v499_v58 = vmax.f32 %v421_v55, 0.0 }
 0x166   :  { %v356_v9 = vadd.f32 %v1480_v7, %v2039_v47  ;;  %v350_v10 = vpop.f32.mrb[7].mxu0  ;;  %v430_v13 = vpop.f32.mrb[7].mxu1  ;;  %v436_v59 = vadd.f32 %v2062_v11, %v2039_v47 }
 0x167   :  { %v351_v12 = vadd.f32 %v2039_v47, %v350_v10  ;;  %1531 = vmatprep.mubr.msk.f32.mxu1 %vm522_vm1, %v483_v6  ;;  %v431_v51 = vadd.f32 %v2039_v47, %v430_v13 }
 0x168   :  { %1532 = vmatmul.mubr.msk.f32.gmra.mrb[20].mxu1 %vm522_vm1, %v484_v8  ;;  %v486_v16 = vmax.f32 %v356_v9, 0.0  ;;  %v502_v4 = vmax.f32 %v436_v59, 0.0 }
 0x169   :  { %v485_v14 = vmax.f32 %v351_v12, 0.0  ;;  %v1483_v15 = vpop.f32.mrb[8].mxu0  ;;  %v2068_v19 = vpop.f32.mrb[8].mxu1  ;;  %v501_v62 = vmax.f32 %v431_v51, 0.0 }
 0x16a   :  { %v366_v17 = vadd.f32 %v1483_v15, %v2039_v47  ;;  %v360_v18 = vpop.f32.mrb[9].mxu0  ;;  %v440_v21 = vpop.f32.mrb[9].mxu1  ;;  %v446_v3 = vadd.f32 %v2068_v19, %v2039_v47 }
 0x16b   :  { %v361_v20 = vadd.f32 %v2039_v47, %v360_v18  ;;  %1534 = vmatprep.mubr.msk.f32.mxu1 %vm522_vm1, %v485_v14  ;;  %v441_v63 = vadd.f32 %v2039_v47, %v440_v21 }
 0x16c   :  { %1535 = vmatmul.mubr.msk.f32.gmra.mrb[22].mxu1 %vm522_vm1, %v486_v16  ;;  %v488_v24 = vmax.f32 %v366_v17, 0.0  ;;  %v504_v7 = vmax.f32 %v446_v3, 0.0  ;;  %v2126_v17 = vld [vmem:[#allocation10] ss:$0 sm:$0xff] }
 0x16d   :  { %v487_v22 = vmax.f32 %v361_v20, 0.0  ;;  %v1486_v23 = vpop.f32.mrb[10].mxu0  ;;  %v1510_v27 = vpop.f32.mrb[10].mxu1  ;;  %v503_v1 = vmax.f32 %v441_v63, 0.0 }
 0x16e   :  { %v376_v25 = vadd.f32 %v1486_v23, %v2039_v47  ;;  %v370_v26 = vpop.f32.mrb[11].mxu0  ;;  %v450_v29 = vpop.f32.mrb[11].mxu1  ;;  %v456_v8 = vadd.f32 %v1510_v27, %v2039_v47 }
 0x16f   :  { %v371_v28 = vadd.f32 %v2039_v47, %v370_v26  ;;  %1537 = vmatprep.mubr.msk.f32.mxu1 %vm522_vm1, %v487_v22  ;;  %v451_v2 = vadd.f32 %v2039_v47, %v450_v29 }
 0x170   :  { %1538 = vmatmul.mubr.msk.f32.gmra.mrb[24].mxu1 %vm522_vm1, %v488_v24  ;;  %v490_v32 = vmax.f32 %v376_v25, 0.0  ;;  %v506_v11 = vmax.f32 %v456_v8, 0.0 }
 0x171   :  { %v489_v30 = vmax.f32 %v371_v28, 0.0  ;;  %v1489_v31 = vpop.f32.mrb[12].mxu0  ;;  %v1513_v35 = vpop.f32.mrb[12].mxu1  ;;  %v505_v5 = vmax.f32 %v451_v2, 0.0 }
 0x172   :  { %v386_v33 = vadd.f32 %v1489_v31, %v2039_v47  ;;  %v380_v34 = vpop.f32.mrb[13].mxu0  ;;  %v460_v37 = vpop.f32.mrb[13].mxu1  ;;  %v466_v12 = vadd.f32 %v1513_v35, %v2039_v47 }
 0x173   :  { %v381_v36 = vadd.f32 %v2039_v47, %v380_v34  ;;  %1540 = vmatprep.mubr.msk.f32.mxu1 %vm522_vm1, %v489_v30  ;;  %v461_v6 = vadd.f32 %v2039_v47, %v460_v37 }
 0x174   :  { %1541 = vmatmul.mubr.msk.f32.gmra.mrb[26].mxu1 %vm522_vm1, %v490_v32  ;;  %v492_v41 = vmax.f32 %v386_v33, 0.0  ;;  %v508_v14 = vmax.f32 %v466_v12, 0.0 }
 0x175   :  { %v491_v38 = vmax.f32 %v381_v36, 0.0  ;;  %v1492_v39 = vpop.f32.mrb[14].mxu0  ;;  %v1516_v44 = vpop.f32.mrb[14].mxu1  ;;  %v507_v9 = vmax.f32 %v461_v6, 0.0 }
 0x176   :  { %v396_v42 = vadd.f32 %v1492_v39, %v2039_v47  ;;  %v390_v43 = vpop.f32.mrb[15].mxu0  ;;  %v470_v46 = vpop.f32.mrb[15].mxu1  ;;  %v476_v15 = vadd.f32 %v1516_v44, %v2039_v47 }
 0x177   :  { %v391_v45 = vadd.f32 %v2039_v47, %v390_v43  ;;  %1543 = vmatprep.mubr.msk.f32.mxu1 %vm522_vm1, %v491_v38  ;;  %v471_v10 = vadd.f32 %v2039_v47, %v470_v46 }
 0x178   :  { %1544 = vmatmul.mubr.msk.f32.gmra.mrb[28].mxu1 %vm522_vm1, %v492_v41  ;;  %v494_v52 = vmax.f32 %v396_v42, 0.0  ;;  %v510_v16 = vmax.f32 %v476_v15, 0.0 }
 0x179   :  { %v493_v48 = vmax.f32 %v391_v45, 0.0  ;;  %v509_v13 = vmax.f32 %v471_v10, 0.0 }
 0x17b   :  { %1546 = vmatprep.mubr.msk.f32.mxu1 %vm522_vm1, %v493_v48 }
 0x17c   :  { %1547 = vmatmul.mubr.msk.f32.gmra.mrb[30].mxu1 %vm522_vm1, %v494_v52 }
 0x17d   :  { %1549 = vmatprep.mubr.msk.f32.mxu1 %vm522_vm1, %v495_v49 }
 0x180   :  { %1550 = vmatmul.mubr.msk.f32.gmra.mrb[32].mxu1 %vm522_vm1, %v496_v56 }
 0x181   :  { %1552 = vmatprep.mubr.msk.f32.mxu1 %vm522_vm1, %v497_v54 }
 0x184   :  { %1553 = vmatmul.mubr.msk.f32.gmra.mrb[34].mxu1 %vm522_vm1, %v498_v60 }
 0x185   :  { %1555 = vmatprep.mubr.msk.f32.mxu1 %vm522_vm1, %v499_v58 }
 0x188   :  { %1556 = vmatmul.mubr.msk.f32.gmra.mrb[36].mxu1 %vm522_vm1, %v500_v0 }
 0x189   :  { %1558 = vmatprep.mubr.msk.f32.mxu1 %vm522_vm1, %v501_v62 }
 0x18c   :  { %1559 = vmatmul.mubr.msk.f32.gmra.mrb[38].mxu1 %vm522_vm1, %v502_v4 }
 0x18d   :  { %1561 = vmatprep.mubr.msk.f32.mxu1 %vm522_vm1, %v503_v1 }
 0x190   :  { %1562 = vmatmul.mubr.msk.f32.gmra.mrb[40].mxu1 %vm522_vm1, %v504_v7 }
 0x191   :  { %1564 = vmatprep.mubr.msk.f32.mxu1 %vm522_vm1, %v505_v5 }
 0x194   :  { %1565 = vmatmul.mubr.msk.f32.gmra.mrb[42].mxu1 %vm522_vm1, %v506_v11 }
 0x195   :  { %1567 = vmatprep.mubr.msk.f32.mxu1 %vm522_vm1, %v507_v9 }
 0x198   :  { %1568 = vmatmul.mubr.msk.f32.gmra.mrb[44].mxu1 %vm522_vm1, %v508_v14 }
 0x199   :  { %1570 = vmatprep.mubr.msk.f32.mxu1 %vm522_vm1, %v509_v13 }
 0x19c   :  { %1571 = vmatmul.mubr.msk.f32.gmra.mrb[46].mxu1 %vm522_vm1, %v510_v16 }
 0x233   :  { %v1527_v18 = vpop.f32.mrb[16].mxu1 }
 0x234   :  { %v691_v19 = vadd.f32 %v1527_v18, %v2126_v17  ;;  %v685_v20 = vpop.f32.mrb[17].mxu1 }
 0x235   :  { %v686_v21 = vadd.f32 %v2126_v17, %v685_v20 }
 0x236   :  { %v845_v24 = vmax.f32 %v691_v19, 0.0 }
 0x237   :  { %v844_v22 = vmax.f32 %v686_v21, 0.0  ;;  %v1530_v23 = vpop.f32.mrb[18].mxu1 }
 0x238   :  { %v701_v47 = vadd.f32 %v1530_v23, %v2126_v17  ;;  %v695_v25 = vpop.f32.mrb[19].mxu1 }
 0x239   :  { %v696_v26 = vadd.f32 %v2126_v17, %v695_v25  ;;  %1581 = vmatprep.mubr.msk.f32.mxu0 %vm522_vm1, %v844_v22 }
 0x23a   :  { %1582 = vmatmul.mubr.msk.f32.vlgmr.msra.gmra.mrb[16].mxu0 %vm522_vm1, %v845_v24  ;;  %v847_v29 = vmax.f32 %v701_v47, 0.0 }
 0x23b   :  { %v846_v27 = vmax.f32 %v696_v26, 0.0  ;;  %v1533_v28 = vpop.f32.mrb[20].mxu1 }
 0x23c   :  { %v711_v30 = vadd.f32 %v1533_v28, %v2126_v17  ;;  %v705_v31 = vpop.f32.mrb[21].mxu1 }
 0x23d   :  { %v706_v32 = vadd.f32 %v2126_v17, %v705_v31  ;;  %1584 = vmatprep.mubr.msk.f32.mxu0 %vm522_vm1, %v846_v27 }
 0x23e   :  { %1585 = vmatmul.mubr.msk.f32.gmra.mrb[18].mxu0 %vm522_vm1, %v847_v29  ;;  %v849_v35 = vmax.f32 %v711_v30, 0.0 }
 0x23f   :  { %v848_v33 = vmax.f32 %v706_v32, 0.0  ;;  %v1536_v34 = vpop.f32.mrb[22].mxu1 }
 0x240   :  { %v721_v36 = vadd.f32 %v1536_v34, %v2126_v17  ;;  %v715_v37 = vpop.f32.mrb[23].mxu1 }
 0x241   :  { %v716_v38 = vadd.f32 %v2126_v17, %v715_v37  ;;  %1587 = vmatprep.mubr.msk.f32.mxu0 %vm522_vm1, %v848_v33 }
 0x242   :  { %1588 = vmatmul.mubr.msk.f32.gmra.mrb[20].mxu0 %vm522_vm1, %v849_v35  ;;  %v851_v41 = vmax.f32 %v721_v36, 0.0 }
 0x243   :  { %v850_v39 = vmax.f32 %v716_v38, 0.0  ;;  %v1539_v40 = vpop.f32.mrb[24].mxu1 }
 0x244   :  { %v731_v42 = vadd.f32 %v1539_v40, %v2126_v17  ;;  %v725_v43 = vpop.f32.mrb[25].mxu1 }
 0x245   :  { %v726_v44 = vadd.f32 %v2126_v17, %v725_v43  ;;  %1590 = vmatprep.mubr.msk.f32.mxu0 %vm522_vm1, %v850_v39 }
 0x246   :  { %1591 = vmatmul.mubr.msk.f32.gmra.mrb[22].mxu0 %vm522_vm1, %v851_v41  ;;  %v853_v48 = vmax.f32 %v731_v42, 0.0 }
 0x247   :  { %v852_v45 = vmax.f32 %v726_v44, 0.0  ;;  %v1542_v46 = vpop.f32.mrb[26].mxu1 }
 0x248   :  { %v741_v49 = vadd.f32 %v1542_v46, %v2126_v17  ;;  %v735_v50 = vpop.f32.mrb[27].mxu1 }
 0x249   :  { %v736_v52 = vadd.f32 %v2126_v17, %v735_v50  ;;  %1593 = vmatprep.mubr.msk.f32.mxu0 %vm522_vm1, %v852_v45 }
 0x24a   :  { %1594 = vmatmul.mubr.msk.f32.gmra.mrb[24].mxu0 %vm522_vm1, %v853_v48  ;;  %v855_v55 = vmax.f32 %v741_v49, 0.0 }
 0x24b   :  { %v854_v53 = vmax.f32 %v736_v52, 0.0  ;;  %v1545_v54 = vpop.f32.mrb[28].mxu1  ;;  %v2192_v52 = vld [vmem:[#allocation13] ss:$0 sm:$0xff] }
 0x24c   :  { %v751_v56 = vadd.f32 %v1545_v54, %v2126_v17  ;;  %v745_v57 = vpop.f32.mrb[29].mxu1 }
 0x24d   :  { %v746_v58 = vadd.f32 %v2126_v17, %v745_v57  ;;  %1596 = vmatprep.mubr.msk.f32.mxu0 %vm522_vm1, %v854_v53 }
 0x24e   :  { %1597 = vmatmul.mubr.msk.f32.gmra.mrb[26].mxu0 %vm522_vm1, %v855_v55  ;;  %v857_v61 = vmax.f32 %v751_v56, 0.0 }
 0x24f   :  { %v856_v51 = vmax.f32 %v746_v58, 0.0  ;;  %v1548_v60 = vpop.f32.mrb[30].mxu1 }
 0x250   :  { %v761_v62 = vadd.f32 %v1548_v60, %v2126_v17  ;;  %v755_v63 = vpop.f32.mrb[31].mxu1 }
 0x251   :  { %v756_v0 = vadd.f32 %v2126_v17, %v755_v63  ;;  %1599 = vmatprep.mubr.msk.f32.mxu0 %vm522_vm1, %v856_v51 }
 0x252   :  { %1600 = vmatmul.mubr.msk.f32.gmra.mrb[28].mxu0 %vm522_vm1, %v857_v61  ;;  %v859_v2 = vmax.f32 %v761_v62, 0.0 }
 0x253   :  { %v858_v59 = vmax.f32 %v756_v0, 0.0  ;;  %v1551_v1 = vpop.f32.mrb[32].mxu1 }
 0x254   :  { %v771_v4 = vadd.f32 %v1551_v1, %v2126_v17  ;;  %v765_v3 = vpop.f32.mrb[33].mxu1 }
 0x255   :  { %v766_v5 = vadd.f32 %v2126_v17, %v765_v3  ;;  %1602 = vmatprep.mubr.msk.f32.mxu0 %vm522_vm1, %v858_v59 }
 0x256   :  { %1603 = vmatmul.mubr.msk.f32.gmra.mrb[30].mxu0 %vm522_vm1, %v859_v2  ;;  %v861_v8 = vmax.f32 %v771_v4, 0.0 }
 0x257   :  { %v860_v6 = vmax.f32 %v766_v5, 0.0  ;;  %v1554_v7 = vpop.f32.mrb[34].mxu1 }
 0x258   :  { %v781_v9 = vadd.f32 %v1554_v7, %v2126_v17  ;;  %v775_v10 = vpop.f32.mrb[35].mxu1 }
 0x259   :  { %v776_v11 = vadd.f32 %v2126_v17, %v775_v10  ;;  %1605 = vmatprep.mubr.msk.f32.mxu0 %vm522_vm1, %v860_v6 }
 0x25a   :  { %1606 = vmatmul.mubr.msk.f32.gmra.mrb[32].mxu0 %vm522_vm1, %v861_v8  ;;  %v863_v14 = vmax.f32 %v781_v9, 0.0 }
 0x25b   :  { %v862_v12 = vmax.f32 %v776_v11, 0.0  ;;  %v1557_v13 = vpop.f32.mrb[36].mxu1 }
 0x25c   :  { %v791_v15 = vadd.f32 %v1557_v13, %v2126_v17  ;;  %v785_v16 = vpop.f32.mrb[37].mxu1 }
 0x25d   :  { %v786_v18 = vadd.f32 %v2126_v17, %v785_v16  ;;  %1608 = vmatprep.mubr.msk.f32.mxu0 %vm522_vm1, %v862_v12 }
 0x25e   :  { %1609 = vmatmul.mubr.msk.f32.gmra.mrb[34].mxu0 %vm522_vm1, %v863_v14  ;;  %v865_v21 = vmax.f32 %v791_v15, 0.0 }
 0x25f   :  { %v864_v19 = vmax.f32 %v786_v18, 0.0  ;;  %v1560_v20 = vpop.f32.mrb[38].mxu1 }
 0x260   :  { %v801_v22 = vadd.f32 %v1560_v20, %v2126_v17  ;;  %v795_v23 = vpop.f32.mrb[39].mxu1 }
 0x261   :  { %v796_v24 = vadd.f32 %v2126_v17, %v795_v23  ;;  %1611 = vmatprep.mubr.msk.f32.mxu0 %vm522_vm1, %v864_v19 }
 0x262   :  { %1612 = vmatmul.mubr.msk.f32.gmra.mrb[36].mxu0 %vm522_vm1, %v865_v21  ;;  %v867_v26 = vmax.f32 %v801_v22, 0.0 }
 0x263   :  { %v866_v47 = vmax.f32 %v796_v24, 0.0  ;;  %v1563_v25 = vpop.f32.mrb[40].mxu1 }
 0x264   :  { %v811_v27 = vadd.f32 %v1563_v25, %v2126_v17  ;;  %v805_v28 = vpop.f32.mrb[41].mxu1 }
 0x265   :  { %v806_v29 = vadd.f32 %v2126_v17, %v805_v28  ;;  %1614 = vmatprep.mubr.msk.f32.mxu0 %vm522_vm1, %v866_v47 }
 0x266   :  { %1615 = vmatmul.mubr.msk.f32.gmra.mrb[38].mxu0 %vm522_vm1, %v867_v26  ;;  %v869_v32 = vmax.f32 %v811_v27, 0.0 }
 0x267   :  { %v868_v30 = vmax.f32 %v806_v29, 0.0  ;;  %v1566_v31 = vpop.f32.mrb[42].mxu1 }
 0x268   :  { %v821_v33 = vadd.f32 %v1566_v31, %v2126_v17  ;;  %v815_v34 = vpop.f32.mrb[43].mxu1 }
 0x269   :  { %v816_v35 = vadd.f32 %v2126_v17, %v815_v34  ;;  %1617 = vmatprep.mubr.msk.f32.mxu0 %vm522_vm1, %v868_v30 }
 0x26a   :  { %1618 = vmatmul.mubr.msk.f32.gmra.mrb[40].mxu0 %vm522_vm1, %v869_v32  ;;  %v871_v38 = vmax.f32 %v821_v33, 0.0 }
 0x26b   :  { %v870_v36 = vmax.f32 %v816_v35, 0.0  ;;  %v1569_v37 = vpop.f32.mrb[44].mxu1 }
 0x26c   :  { %v831_v39 = vadd.f32 %v1569_v37, %v2126_v17  ;;  %v825_v40 = vpop.f32.mrb[45].mxu1 }
 0x26d   :  { %v826_v41 = vadd.f32 %v2126_v17, %v825_v40  ;;  %1620 = vmatprep.mubr.msk.f32.mxu0 %vm522_vm1, %v870_v36 }
 0x26e   :  { %1621 = vmatmul.mubr.msk.f32.gmra.mrb[42].mxu0 %vm522_vm1, %v871_v38  ;;  %v873_v44 = vmax.f32 %v831_v39, 0.0 }
 0x26f   :  { %v872_v42 = vmax.f32 %v826_v41, 0.0  ;;  %v1572_v43 = vpop.f32.mrb[46].mxu1 }
 0x270   :  { %v841_v45 = vadd.f32 %v1572_v43, %v2126_v17  ;;  %v835_v46 = vpop.f32.mrb[47].mxu1 }
 0x271   :  { %v836_v48 = vadd.f32 %v2126_v17, %v835_v46  ;;  %1623 = vmatprep.mubr.msk.f32.mxu0 %vm522_vm1, %v872_v42 }
 0x272   :  { %1624 = vmatmul.mubr.msk.f32.gmra.mrb[44].mxu0 %vm522_vm1, %v873_v44  ;;  %v875_v50 = vmax.f32 %v841_v45, 0.0 }
 0x273   :  { %v874_v49 = vmax.f32 %v836_v48, 0.0 }
 0x275   :  { %1626 = vmatprep.mubr.msk.f32.mxu0 %vm522_vm1, %v874_v49 }
 0x276   :  { %1627 = vmatmul.mubr.msk.f32.gmra.mrb[46].mxu0 %vm522_vm1, %v875_v50 }
 0x30d   :  { %v1583_v53 = vpop.f32.mrb[16].mxu0 }
 0x30e   :  { %v1055_v54 = vadd.f32 %v1583_v53, %v2192_v52  ;;  %v1049_v55 = vpop.f32.mrb[17].mxu0 }
 0x30f   :  { %v1050_v56 = vadd.f32 %v2192_v52, %v1049_v55 }
 0x310   :  { %1209 = vst.msk [vmem:[#allocation14 + $0x8] sm:$0xff] %vm157_vm0, %v1055_v54 }
 0x311   :  { %1208 = vst.msk [vmem:[#allocation14] sm:$0xff] %vm157_vm0, %v1050_v56  ;;  %v1586_v17 = vpop.f32.mrb[18].mxu0 }
 0x312   :  { %v1065_v57 = vadd.f32 %v1586_v17, %v2192_v52  ;;  %v1059_v58 = vpop.f32.mrb[19].mxu0 }
 0x313   :  { %v1060_v51 = vadd.f32 %v2192_v52, %v1059_v58 }
 0x314   :  { %1211 = vst.msk [vmem:[#allocation14 + $0x18] sm:$0xff] %vm157_vm0, %v1065_v57 }
 0x315   :  { %1210 = vst.msk [vmem:[#allocation14 + $0x10] sm:$0xff] %vm157_vm0, %v1060_v51  ;;  %v1589_v60 = vpop.f32.mrb[20].mxu0 }
 0x316   :  { %v1075_v61 = vadd.f32 %v1589_v60, %v2192_v52  ;;  %v1069_v62 = vpop.f32.mrb[21].mxu0 }
 0x317   :  { %v1070_v63 = vadd.f32 %v2192_v52, %v1069_v62 }
 0x318   :  { %1213 = vst.msk [vmem:[#allocation14 + $0x28] sm:$0xff] %vm157_vm0, %v1075_v61 }
 0x319   :  { %1212 = vst.msk [vmem:[#allocation14 + $0x20] sm:$0xff] %vm157_vm0, %v1070_v63  ;;  %v1592_v0 = vpop.f32.mrb[22].mxu0 }
 0x31a   :  { %v1085_v59 = vadd.f32 %v1592_v0, %v2192_v52  ;;  %v1079_v1 = vpop.f32.mrb[23].mxu0 }
 0x31b   :  { %v1080_v2 = vadd.f32 %v2192_v52, %v1079_v1 }
 0x31c   :  { %1215 = vst.msk [vmem:[#allocation14 + $0x38] sm:$0xff] %vm157_vm0, %v1085_v59 }
 0x31d   :  { %1214 = vst.msk [vmem:[#allocation14 + $0x30] sm:$0xff] %vm157_vm0, %v1080_v2  ;;  %v1595_v4 = vpop.f32.mrb[24].mxu0 }
 0x31e   :  { %v1095_v3 = vadd.f32 %v1595_v4, %v2192_v52  ;;  %v1089_v5 = vpop.f32.mrb[25].mxu0 }
 0x31f   :  { %v1090_v6 = vadd.f32 %v2192_v52, %v1089_v5 }
 0x320   :  { %1217 = vst.msk [vmem:[#allocation14 + $0x48] sm:$0xff] %vm157_vm0, %v1095_v3 }
 0x321   :  { %1216 = vst.msk [vmem:[#allocation14 + $0x40] sm:$0xff] %vm157_vm0, %v1090_v6  ;;  %v1598_v7 = vpop.f32.mrb[26].mxu0 }
 0x322   :  { %v1105_v8 = vadd.f32 %v1598_v7, %v2192_v52  ;;  %v1099_v9 = vpop.f32.mrb[27].mxu0 }
 0x323   :  { %v1100_v10 = vadd.f32 %v2192_v52, %v1099_v9 }
 0x324   :  { %1219 = vst.msk [vmem:[#allocation14 + $0x58] sm:$0xff] %vm157_vm0, %v1105_v8 }
 0x325   :  { %1218 = vst.msk [vmem:[#allocation14 + $0x50] sm:$0xff] %vm157_vm0, %v1100_v10  ;;  %v1601_v11 = vpop.f32.mrb[28].mxu0 }
 0x326   :  { %v1115_v12 = vadd.f32 %v1601_v11, %v2192_v52  ;;  %v1109_v13 = vpop.f32.mrb[29].mxu0 }
 0x327   :  { %v1110_v14 = vadd.f32 %v2192_v52, %v1109_v13 }
 0x328   :  { %1221 = vst.msk [vmem:[#allocation14 + $0x68] sm:$0xff] %vm157_vm0, %v1115_v12 }
 0x329   :  { %1220 = vst.msk [vmem:[#allocation14 + $0x60] sm:$0xff] %vm157_vm0, %v1110_v14  ;;  %v1604_v15 = vpop.f32.mrb[30].mxu0 }
 0x32a   :  { %v1125_v16 = vadd.f32 %v1604_v15, %v2192_v52  ;;  %v1119_v18 = vpop.f32.mrb[31].mxu0 }
 0x32b   :  { %v1120_v19 = vadd.f32 %v2192_v52, %v1119_v18 }
 0x32c   :  { %1223 = vst.msk [vmem:[#allocation14 + $0x78] sm:$0xff] %vm157_vm0, %v1125_v16 }
 0x32d   :  { %1222 = vst.msk [vmem:[#allocation14 + $0x70] sm:$0xff] %vm157_vm0, %v1120_v19  ;;  %v1607_v20 = vpop.f32.mrb[32].mxu0 }
 0x32e   :  { %v1135_v21 = vadd.f32 %v1607_v20, %v2192_v52  ;;  %v1129_v22 = vpop.f32.mrb[33].mxu0 }
 0x32f   :  { %v1130_v23 = vadd.f32 %v2192_v52, %v1129_v22 }
 0x330   :  { %1225 = vst.msk [vmem:[#allocation14 + $0x88] sm:$0xff] %vm157_vm0, %v1135_v21 }
 0x331   :  { %1224 = vst.msk [vmem:[#allocation14 + $0x80] sm:$0xff] %vm157_vm0, %v1130_v23  ;;  %v1610_v24 = vpop.f32.mrb[34].mxu0 }
 0x332   :  { %v1145_v47 = vadd.f32 %v1610_v24, %v2192_v52  ;;  %v1139_v25 = vpop.f32.mrb[35].mxu0 }
 0x333   :  { %v1140_v26 = vadd.f32 %v2192_v52, %v1139_v25 }
 0x334   :  { %1227 = vst.msk [vmem:[#allocation14 + $0x98] sm:$0xff] %vm157_vm0, %v1145_v47 }
 0x335   :  { %1226 = vst.msk [vmem:[#allocation14 + $0x90] sm:$0xff] %vm157_vm0, %v1140_v26  ;;  %v1613_v27 = vpop.f32.mrb[36].mxu0 }
 0x336   :  { %v1155_v28 = vadd.f32 %v1613_v27, %v2192_v52  ;;  %v1149_v29 = vpop.f32.mrb[37].mxu0 }
 0x337   :  { %v1150_v30 = vadd.f32 %v2192_v52, %v1149_v29 }
 0x338   :  { %1229 = vst.msk [vmem:[#allocation14 + $0xa8] sm:$0xff] %vm157_vm0, %v1155_v28 }
 0x339   :  { %1228 = vst.msk [vmem:[#allocation14 + $0xa0] sm:$0xff] %vm157_vm0, %v1150_v30  ;;  %v1616_v31 = vpop.f32.mrb[38].mxu0 }
 0x33a   :  { %v1165_v32 = vadd.f32 %v1616_v31, %v2192_v52  ;;  %v1159_v33 = vpop.f32.mrb[39].mxu0 }
 0x33b   :  { %v1160_v34 = vadd.f32 %v2192_v52, %v1159_v33 }
 0x33c   :  { %1231 = vst.msk [vmem:[#allocation14 + $0xb8] sm:$0xff] %vm157_vm0, %v1165_v32 }
 0x33d   :  { %1230 = vst.msk [vmem:[#allocation14 + $0xb0] sm:$0xff] %vm157_vm0, %v1160_v34  ;;  %v1619_v35 = vpop.f32.mrb[40].mxu0 }
 0x33e   :  { %v1175_v36 = vadd.f32 %v1619_v35, %v2192_v52  ;;  %v1169_v37 = vpop.f32.mrb[41].mxu0 }
 0x33f   :  { %v1170_v38 = vadd.f32 %v2192_v52, %v1169_v37 }
 0x340   :  { %1233 = vst.msk [vmem:[#allocation14 + $0xc8] sm:$0xff] %vm157_vm0, %v1175_v36 }
 0x341   :  { %1232 = vst.msk [vmem:[#allocation14 + $0xc0] sm:$0xff] %vm157_vm0, %v1170_v38  ;;  %v1622_v39 = vpop.f32.mrb[42].mxu0 }
 0x342   :  { %v1185_v40 = vadd.f32 %v1622_v39, %v2192_v52  ;;  %v1179_v41 = vpop.f32.mrb[43].mxu0 }
 0x343   :  { %v1180_v42 = vadd.f32 %v2192_v52, %v1179_v41 }
 0x344   :  { %1235 = vst.msk [vmem:[#allocation14 + $0xd8] sm:$0xff] %vm157_vm0, %v1185_v40 }
 0x345   :  { %1234 = vst.msk [vmem:[#allocation14 + $0xd0] sm:$0xff] %vm157_vm0, %v1180_v42  ;;  %v1625_v43 = vpop.f32.mrb[44].mxu0 }
 0x346   :  { %v1195_v44 = vadd.f32 %v1625_v43, %v2192_v52  ;;  %v1189_v45 = vpop.f32.mrb[45].mxu0 }
 0x347   :  { %v1190_v46 = vadd.f32 %v2192_v52, %v1189_v45 }
 0x348   :  { %1237 = vst.msk [vmem:[#allocation14 + $0xe8] sm:$0xff] %vm157_vm0, %v1195_v44 }
 0x349   :  { %1236 = vst.msk [vmem:[#allocation14 + $0xe0] sm:$0xff] %vm157_vm0, %v1190_v46  ;;  %v1628_v48 = vpop.f32.mrb[46].mxu0 }
 0x34a   :  { %v1205_v49 = vadd.f32 %v1628_v48, %v2192_v52  ;;  %v1199_v50 = vpop.f32.mrb[47].mxu0 }
 0x34b   :  { %v1200_v53 = vadd.f32 %v2192_v52, %v1199_v50 }
 0x34c   :  { %1239 = vst.msk [vmem:[#allocation14 + $0xf8] sm:$0xff] %vm157_vm0, %v1205_v49 }
 0x34d   :  { %1238 = vst.msk [vmem:[#allocation14 + $0xf0] sm:$0xff] %vm157_vm0, %v1200_v53 }
 0x34e   :  { %1826 = shalt.err (!%p1823_p4)
}
 0x34f   :  { %s1827_s19 = scalar_lea.hbm %s2280_s7, 4096 }
 0x350   :  { %p1828_p5 = scmp.ne.s32.totalorder %s2280_s7, %s1827_s19  ;;  %p1831_p6 = scmp.lt.u32.totalorder %s1827_s19, %s2280_s7 }
 0x352   :  { %p1833_p7 = pnand %p1831_p6, %p1828_p5 }
 0x354   :  { %1836 = shalt.err (!%p1833_p7)
}
 0x355   :  { %1251 = dma.vmem_to_hbm [thread:$0]  %s1246_s30, 4096, %s2280_s7, [#allocation4], %s1849_s13, %s1849_s13, %s1850_s14  }
 0x356   :  { %1845 = dma.done.wait [#allocation4], 4096  }
 0x357   :  { %1846 = vsyncadd [#allocation4], 4294963200 }
 0x358   :  { %1255 = vsyncpa [#allocation3], 1 }
 0x359   :  { %1256 = vsyncpa [#allocation6], 1 }
 0x35a   :  { %1257 = vsyncpa [#allocation9], 1 }
 0x35b   :  { %1258 = vsyncpa [#allocation12], 1 }
 0x35c   :  { %1259 = vsyncpa [#allocation4], 1 }

</bundles_post_ra>
